<compile_context>
chip_gen: v5e
topology: v5e:2x2
jax: 0.10.0
libtpu: 0.0.40
codegen_flags: <defaults>
</compile_context>

<pallas_src>
import functools

import jax
import jax.numpy as jnp
from jax.experimental import pallas as pl
from jax.experimental.pallas import tpu as pltpu


def _round_up(x, m):
    return (x + m - 1) // m * m


def _vmem_budget_bytes():
    """Generation-aware VMEM budget: physical capacity minus ~8 MiB headroom
    (~120 MiB on v5e/v6e, ~56 MiB on v7x)."""
    try:
        cap = int(pltpu.get_tpu_info().vmem_capacity_bytes)
    except Exception:  # no hardware info available -> conservative default
        cap = 64 * 2**20
    return max(cap - 8 * 2**20, 32 * 2**20)


def prepare_params(params, *, compute_dtype=jnp.bfloat16):
    """One-time parameter preparation (cache the returned dict across calls).

    * weights cast to the MXU compute dtype (bf16 by default),
    * encoder_1 output lane-padded to a multiple of 128 (unmasked vst),
    * encoder_1 / decoder_2 weights fused into one [H, Hcp+H] matrix so stages
      2+3 run as a single output-chunk loop over one resident buffer.
    """
    w0, b0, w1, b1, w2, b2 = params
    H = w0.shape[0]
    Hc = w1.shape[1]
    assert H % 128 == 0, "hidden size must be a multiple of 128"
    Hcp = _round_up(Hc, 128)
    w1p = jnp.pad(w1, ((0, 0), (0, Hcp - Hc))) if Hcp != Hc else w1
    b1p = jnp.pad(b1, ((0, Hcp - Hc),)) if Hcp != Hc else b1
    return {
        "H": H, "Hc": Hc, "Hcp": Hcp, "dtype": compute_dtype,
        "w0": w0.astype(compute_dtype),
        "b0": b0.astype(jnp.float32).reshape(1, H),
        "w12": jnp.concatenate([w1p, w2], axis=1).astype(compute_dtype),
        "b12": jnp.concatenate([b1p, b2]).astype(jnp.float32).reshape(1, Hcp + H),
    }


def _proj_resident_kernel(n_chunk, Hcp, x_ref, w0_ref, b0_ref, w12_ref, b12_ref,
                          out_ref, outc_ref, xfull_ref):
    """Weights fully VMEM-resident; 1-D grid over row tiles."""
    H = w0_ref.shape[1]
    # In-kernel activation cast (VPU work hidden under the MXU; avoids a
    # separate XLA cast pass over x in HBM).
    xk = x_ref[...].astype(xfull_ref.dtype)

    # Stage 1: encoder_0, chunked over output lanes so the live f32 block is
    # bounded by (tm, n_chunk) instead of (tm, H).
    for c in range(0, H, n_chunk):
        w = min(n_chunk, H - c)
        xfull_ref[:, c:c + w] = (
            jnp.dot(xk, w0_ref[:, c:c + w], preferred_element_type=jnp.float32)
            + b0_ref[:, c:c + w]).astype(xfull_ref.dtype)
    # TODO(synk): x_full is held in the compute dtype (bf16 by default); keep
    # it f32 (2x scratch) if the extra activation rounding matters.

    # Stages 2+3: x_full @ [W1p | W2] in one chunk loop over the fused lane
    # dim; chunks are routed so they never straddle the Hcp boundary.
    def emit(dst_ref, lo, width):
        for c in range(0, width, n_chunk):
            w = min(n_chunk, width - c)
            dst_ref[:, c:c + w] = (
                jnp.dot(xfull_ref[...], w12_ref[:, lo + c:lo + c + w],
                        preferred_element_type=jnp.float32)
                + b12_ref[:, lo + c:lo + c + w]).astype(dst_ref.dtype)

    emit(outc_ref, 0, Hcp)    # encoder_1 (lane-padded)
    emit(out_ref, Hcp, H)     # decoder_2


def _proj_ktiled_kernel(n_chunk, Hcp, x_ref, w0_ref, b0_ref, w12_ref, b12_ref,
                        out_ref, outc_ref, xcast_ref, xfc_ref, acc_ref):
    """Streaming variant: a second ('arbitrary') grid axis tiles the x_full
    hidden dim in chunks of tk, so only (H, tk) + (tk, Hcp+H) weight blocks
    are resident at any time (needed for large H on v7x's 64 MiB VMEM)."""
    k = pl.program_id(1)
    nk = pl.num_programs(1)
    tk = w0_ref.shape[1]
    N = w12_ref.shape[1]          # Hcp + H

    @pl.when(k == 0)
    def _():
        xcast_ref[...] = x_ref[...].astype(xcast_ref.dtype)   # cast once / row tile
        acc_ref[...] = jnp.broadcast_to(b12_ref[...], acc_ref.shape)

    # Stage 1: this k-chunk of x_full = x @ W0[:, k*tk:(k+1)*tk] + b0 chunk.
    step = min(n_chunk, tk)
    for c in range(0, tk, step):
        w = min(step, tk - c)
        xfc_ref[:, c:c + w] = (
            jnp.dot(xcast_ref[...], w0_ref[:, c:c + w],
                    preferred_element_type=jnp.float32)
            + b0_ref[:, c:c + w]).astype(xfc_ref.dtype)

    # Stages 2+3: accumulate this k-chunk's contribution in f32.
    for c in range(0, N, n_chunk):
        w = min(n_chunk, N - c)
        acc_ref[:, c:c + w] += jnp.dot(
            xfc_ref[...], w12_ref[:, c:c + w], preferred_element_type=jnp.float32)

    @pl.when(k == nk - 1)
    def _():
        outc_ref[...] = acc_ref[:, :Hcp].astype(outc_ref.dtype)
        out_ref[...] = acc_ref[:, Hcp:].astype(out_ref.dtype)


def projection_forward(x, params, *, tm=256, tk=None, n_chunk=256,
                       use_bf16=True, force_ktiled=False, weight_buffers=1):
    """x: (..., H) -> (x_out (..., H), x_compress (..., H//16)).

    `params` is either the raw (w0,b0,w1,b1,w2,b2) tuple or the cached dict
    from prepare_params (preferred: avoids re-casting weights every call).
    """
    prep = params if isinstance(params, dict) else prepare_params(
        params, compute_dtype=jnp.bfloat16 if use_bf16 else jnp.float32)
    H, Hc, Hcp = prep["H"], prep["Hc"], prep["Hcp"]
    cdtype = prep["dtype"]
    w0, b0, w12, b12 = prep["w0"], prep["b0"], prep["w12"], prep["b12"]
    Ncomb = Hcp + H

    lead = x.shape[:-1]
    x2d = x.reshape(-1, H)
    M = x2d.shape[0]

    # Row tile: multiple of 8 sublanes; when there is enough work keep >=2
    # grid steps so both v7x TensorCores get a share of the 'parallel' axis.
    tm = max(8, min(tm, _round_up(M, 8)))
    if M >= 16 and _round_up(M, tm) // tm < 2:
        tm = max(8, _round_up((M + 1) // 2, 8))
    Mp = _round_up(M, tm)
    if Mp != M:
        x2d = jnp.pad(x2d, ((0, Mp - M), (0, 0)))

    bpe = jnp.dtype(cdtype).itemsize          # compute-dtype bytes (weights)
    abytes = jnp.dtype(x.dtype).itemsize      # activation / output bytes
    budget = _vmem_budget_bytes()
    flops = 2 * Mp * H * (H + Ncomb)

    out_shape = (jax.ShapeDtypeStruct((Mp, H), x.dtype),
                 jax.ShapeDtypeStruct((Mp, Hcp), x.dtype))

    def _resident_call(buffers):
        nb = buffers if buffers else 2
        need = (nb * (H * H + H * Ncomb) * bpe + nb * (H + Ncomb) * 4
                + 2 * tm * H * abytes + 2 * tm * (H + Hcp) * abytes
                + tm * H * bpe)
        if buffers is None:
            def cspec(shape):
                return pl.BlockSpec(shape, lambda i: (0,) * len(shape))
        else:
            def cspec(shape):
                return pl.BlockSpec(shape, lambda i: (0,) * len(shape),
                                    pipeline_mode=pl.Buffered(buffers))
        return pl.pallas_call(
            functools.partial(_proj_resident_kernel, n_chunk, Hcp),
            out_shape=out_shape,
            grid_spec=pltpu.PrefetchScalarGridSpec(
                num_scalar_prefetch=0,
                grid=(Mp // tm,),
                in_specs=[
                    pl.BlockSpec((tm, H), lambda i: (i, 0)),   # x row tile
                    cspec((H, H)),        # W0          (resident, single-buffered)
                    cspec((1, H)),        # b0
                    cspec((H, Ncomb)),    # [W1p | W2]  (resident, single-buffered)
                    cspec((1, Ncomb)),    # [b1p | b2]
                ],
                out_specs=[pl.BlockSpec((tm, H), lambda i: (i, 0)),
                           pl.BlockSpec((tm, Hcp), lambda i: (i, 0))],
                scratch_shapes=[pltpu.VMEM((tm, H), cdtype)],  # x_full staging
            ),
            compiler_params=pltpu.CompilerParams(
                dimension_semantics=("parallel",),
                vmem_limit_bytes=int(min(max(need * 3 // 2, 32 * 2**20), budget))),
            cost_estimate=pl.CostEstimate(
                flops=flops, transcendentals=0,
                bytes_accessed=(H * H + H * Ncomb) * bpe + Mp * H * abytes
                               + Mp * (H + Hcp) * abytes),
        )(x2d, w0, b0, w12, b12)

    def _ktiled_call():
        tkk = tk or next(c for c in (512, 256, 128) if H % c == 0)
        assert H % tkk == 0, "tk must divide the hidden size"
        need = (2 * (H * tkk + tkk * Ncomb) * bpe + 2 * (tkk + Ncomb) * 4
                + 2 * tm * H * abytes + 2 * tm * (H + Hcp) * abytes
                + tm * Ncomb * 4 + tm * H * bpe + tm * tkk * bpe)
        return pl.pallas_call(
            functools.partial(_proj_ktiled_kernel, n_chunk, Hcp),
            out_shape=out_shape,
            grid_spec=pltpu.PrefetchScalarGridSpec(
                num_scalar_prefetch=0,
                grid=(Mp // tm, H // tkk),
                in_specs=[
                    pl.BlockSpec((tm, H), lambda i, k: (i, 0)),       # x row tile
                    pl.BlockSpec((H, tkk), lambda i, k: (0, k)),      # W0 k-chunk
                    pl.BlockSpec((1, tkk), lambda i, k: (0, k)),      # b0 k-chunk
                    pl.BlockSpec((tkk, Ncomb), lambda i, k: (k, 0)),  # W12 k-chunk
                    pl.BlockSpec((1, Ncomb), lambda i, k: (0, 0)),    # b12
                ],
                out_specs=[pl.BlockSpec((tm, H), lambda i, k: (i, 0)),
                           pl.BlockSpec((tm, Hcp), lambda i, k: (i, 0))],
                scratch_shapes=[
                    pltpu.VMEM((tm, H), cdtype),            # x cast (per row tile)
                    pltpu.VMEM((tm, tkk), cdtype),          # x_full k-chunk
                    pltpu.VMEM((tm, Ncomb), jnp.float32),   # fused f32 accumulator
                ],
            ),
            compiler_params=pltpu.CompilerParams(
                dimension_semantics=("parallel", "arbitrary"),
                vmem_limit_bytes=int(min(max(need * 3 // 2, 32 * 2**20), budget))),
            cost_estimate=pl.CostEstimate(
                flops=flops, transcendentals=0,
                bytes_accessed=(Mp // tm) * (H * H + H * Ncomb) * bpe
                               + Mp * H * abytes + Mp * (H + Hcp) * abytes),
        )(x2d, w0, b0, w12, b12)

    nb = weight_buffers if weight_buffers else 2
    resident_need = (nb * (H * H + H * Ncomb) * bpe + nb * (H + Ncomb) * 4
                     + 2 * tm * H * abytes + 2 * tm * (H + Hcp) * abytes
                     + tm * H * bpe)
    if force_ktiled or resident_need > budget:
        out, out_c = _ktiled_call()
    elif weight_buffers is None:
        out, out_c = _resident_call(None)
    else:
        try:
            out, out_c = _resident_call(weight_buffers)
        except Exception:
            # Fallback if this JAX/Mosaic build rejects pl.Buffered(1) on a
            # constant-index BlockSpec (only cost: 2x weight VMEM residency).
            out, out_c = _resident_call(None)

    out = out[:M].reshape(*lead, H)
    out_c = out_c[:M, :Hc].reshape(*lead, Hc)
    return out, out_c


def init_params(key, hidden):
    """Deterministic init matching nn.Linear shapes; weights stored transposed
    as (in_features, out_features)."""
    hc = hidden // 16
    k = jax.random.split(key, 6)
    scale = 1.0 / jnp.sqrt(hidden)
    w0 = jax.random.uniform(k[0], (hidden, hidden), jnp.float32, -scale, scale)
    b0 = jax.random.uniform(k[1], (hidden,), jnp.float32, -scale, scale)
    w1 = jax.random.uniform(k[2], (hidden, hc), jnp.float32, -scale, scale)
    b1 = jax.random.uniform(k[3], (hc,), jnp.float32, -scale, scale)
    w2 = jax.random.uniform(k[4], (hidden, hidden), jnp.float32, -scale, scale)
    b2 = jax.random.uniform(k[5], (hidden,), jnp.float32, -scale, scale)
    return (w0, b0, w1, b1, w2, b2)


def _reference(x, params):
    w0, b0, w1, b1, w2, b2 = params
    x_full = x @ w0 + b0
    return (x_full @ w2 + b2, x_full @ w1 + b1)


if __name__ == "__main__":
    key = jax.random.PRNGKey(0)
    hidden = 256          # small synthetic hidden_size; hidden // 16 = 16
    batch, seq = 2, 8

    kx, kp = jax.random.split(key)
    x = jax.random.normal(kx, (batch, seq, hidden), jnp.float32)
    params = init_params(kp, hidden)
    ref_out, ref_out_c = _reference(x, params)

    # bf16 MXU path with cached pre-cast/fused weights (production path).
    prep_bf16 = prepare_params(params, compute_dtype=jnp.bfloat16)
    out, out_c = projection_forward(x, prep_bf16)
    out, out_c = jax.block_until_ready((out, out_c))
    assert out.shape == (batch, seq, hidden)
    assert out_c.shape == (batch, seq, hidden // 16)
    assert jnp.allclose(out, ref_out, atol=5e-2, rtol=5e-2)
    assert jnp.allclose(out_c, ref_out_c, atol=5e-2, rtol=5e-2)

    # Streaming K-tiled path (auto-selected when resident weights exceed the
    # VMEM budget, e.g. H >= 4096 bf16 on v7x); force it here with tk=128 so
    # the accumulator logic is exercised (2 k-steps at H=256).
    outk, outk_c = projection_forward(x, prep_bf16, force_ktiled=True, tk=128)
    outk, outk_c = jax.block_until_ready((outk, outk_c))
    assert jnp.allclose(outk, ref_out, atol=5e-2, rtol=5e-2)
    assert jnp.allclose(outk_c, ref_out_c, atol=5e-2, rtol=5e-2)

    # f32 path: exact semantics (accuracy validation only; discouraged on v5e).
    out32, out_c32 = projection_forward(x, params, use_bf16=False)
    out32, out_c32 = jax.block_until_ready((out32, out_c32))
    assert jnp.allclose(out32, ref_out, atol=1e-4, rtol=1e-4)
    assert jnp.allclose(out_c32, ref_out_c, atol=1e-4, rtol=1e-4)

    print("KERNEL_OK")
</pallas_src>

<mosaic_0001>
module attributes {stable_mosaic.version = 11 : i64} {
  func.func @_proj_resident_kernel(%arg0: i32, %arg1: memref<8x256xf32, #tpu.memory_space<vmem>>, %arg2: memref<256x256xbf16, #tpu.memory_space<vmem>>, %arg3: memref<1x256xf32, #tpu.memory_space<vmem>>, %arg4: memref<256x384xbf16, #tpu.memory_space<vmem>>, %arg5: memref<1x384xf32, #tpu.memory_space<vmem>>, %arg6: memref<8x256xf32, #tpu.memory_space<vmem>>, %arg7: memref<8x128xf32, #tpu.memory_space<vmem>>, %arg8: memref<8x256xbf16, #tpu.memory_space<vmem>>) attributes {dimension_semantics = [#tpu.dimension_semantics<parallel>], iteration_bounds = array<i64: 2>, scalar_prefetch = 0 : i64, scratch_operands = 1 : i64, tpu.core_type = #tpu.core_type<tc>, window_params = [{transform_indices = @transform_0, window_bounds = array<i64: 8, 256>}, {pipeline_mode = #tpu.pipeline_mode<synchronous>, transform_indices = @transform_1, window_bounds = array<i64: 256, 256>}, {pipeline_mode = #tpu.pipeline_mode<synchronous>, transform_indices = @transform_2, window_bounds = array<i64: 1, 256>}, {pipeline_mode = #tpu.pipeline_mode<synchronous>, transform_indices = @transform_3, window_bounds = array<i64: 256, 384>}, {pipeline_mode = #tpu.pipeline_mode<synchronous>, transform_indices = @transform_4, window_bounds = array<i64: 1, 384>}, {transform_indices = @transform_5, window_bounds = array<i64: 8, 256>}, {transform_indices = @transform_6, window_bounds = array<i64: 8, 128>}]} {
    %c0 = arith.constant 0 : index
    %c0_0 = arith.constant 0 : index
    %0 = vector.load %arg1[%c0, %c0_0] : memref<8x256xf32, #tpu.memory_space<vmem>>, vector<8x256xf32>
    %1 = arith.truncf %0 : vector<8x256xf32> to vector<8x256xbf16>
    %c0_1 = arith.constant 0 : index
    %c0_2 = arith.constant 0 : index
    %2 = vector.load %arg2[%c0_1, %c0_2] : memref<256x256xbf16, #tpu.memory_space<vmem>>, vector<256x256xbf16>
    %cst = arith.constant dense<0.000000e+00> : vector<8x256xf32>
    %3 = tpu.matmul %1, %2, %cst {dimension_numbers = #tpu.dot_dimension_numbers<[1], [0], [0], [1], [0, 0, 1, 1], [], []>} : vector<8x256xbf16>, vector<256x256xbf16>, vector<8x256xf32> -> vector<8x256xf32>
    %c0_3 = arith.constant 0 : index
    %c0_4 = arith.constant 0 : index
    %4 = vector.load %arg3[%c0_3, %c0_4] : memref<1x256xf32, #tpu.memory_space<vmem>>, vector<1x256xf32>
    %5 = vector.broadcast %4 : vector<1x256xf32> to vector<8x256xf32>
    %6 = arith.addf %3, %5 : vector<8x256xf32>
    %7 = arith.truncf %6 : vector<8x256xf32> to vector<8x256xbf16>
    %c0_5 = arith.constant 0 : index
    %c0_6 = arith.constant 0 : index
    %8 = vector.load %arg8[%c0_5, %c0_6] : memref<8x256xbf16, #tpu.memory_space<vmem>>, vector<8x256xbf16>
    tpu.vector_store %arg8[%c0_5, %c0_6], %7 {strides = array<i32>} : memref<8x256xbf16, #tpu.memory_space<vmem>>, vector<8x256xbf16>,
    %c0_7 = arith.constant 0 : index
    %c0_8 = arith.constant 0 : index
    %9 = vector.load %arg8[%c0_7, %c0_8] : memref<8x256xbf16, #tpu.memory_space<vmem>>, vector<8x256xbf16>
    %c0_9 = arith.constant 0 : index
    %c0_10 = arith.constant 0 : index
    %10 = vector.load %arg4[%c0_9, %c0_10] : memref<256x384xbf16, #tpu.memory_space<vmem>>, vector<256x128xbf16>
    %cst_11 = arith.constant dense<0.000000e+00> : vector<8x128xf32>
    %11 = tpu.matmul %9, %10, %cst_11 {dimension_numbers = #tpu.dot_dimension_numbers<[1], [0], [0], [1], [0, 0, 1, 1], [], []>} : vector<8x256xbf16>, vector<256x128xbf16>, vector<8x128xf32> -> vector<8x128xf32>
    %c0_12 = arith.constant 0 : index
    %c0_13 = arith.constant 0 : index
    %12 = vector.load %arg5[%c0_12, %c0_13] : memref<1x384xf32, #tpu.memory_space<vmem>>, vector<1x128xf32>
    %13 = vector.broadcast %12 : vector<1x128xf32> to vector<8x128xf32>
    %14 = arith.addf %11, %13 : vector<8x128xf32>
    %c0_14 = arith.constant 0 : index
    %c0_15 = arith.constant 0 : index
    %15 = vector.load %arg7[%c0_14, %c0_15] : memref<8x128xf32, #tpu.memory_space<vmem>>, vector<8x128xf32>
    tpu.vector_store %arg7[%c0_14, %c0_15], %14 {strides = array<i32>} : memref<8x128xf32, #tpu.memory_space<vmem>>, vector<8x128xf32>,
    %c0_16 = arith.constant 0 : index
    %c0_17 = arith.constant 0 : index
    %16 = vector.load %arg8[%c0_16, %c0_17] : memref<8x256xbf16, #tpu.memory_space<vmem>>, vector<8x256xbf16>
    %c0_18 = arith.constant 0 : index
    %c128 = arith.constant 128 : index
    %17 = vector.load %arg4[%c0_18, %c128] : memref<256x384xbf16, #tpu.memory_space<vmem>>, vector<256x256xbf16>
    %cst_19 = arith.constant dense<0.000000e+00> : vector<8x256xf32>
    %18 = tpu.matmul %16, %17, %cst_19 {dimension_numbers = #tpu.dot_dimension_numbers<[1], [0], [0], [1], [0, 0, 1, 1], [], []>} : vector<8x256xbf16>, vector<256x256xbf16>, vector<8x256xf32> -> vector<8x256xf32>
    %c0_20 = arith.constant 0 : index
    %c128_21 = arith.constant 128 : index
    %19 = vector.load %arg5[%c0_20, %c128_21] : memref<1x384xf32, #tpu.memory_space<vmem>>, vector<1x256xf32>
    %20 = vector.broadcast %19 : vector<1x256xf32> to vector<8x256xf32>
    %21 = arith.addf %18, %20 : vector<8x256xf32>
    %c0_22 = arith.constant 0 : index
    %c0_23 = arith.constant 0 : index
    %22 = vector.load %arg6[%c0_22, %c0_23] : memref<8x256xf32, #tpu.memory_space<vmem>>, vector<8x256xf32>
    tpu.vector_store %arg6[%c0_22, %c0_23], %21 {strides = array<i32>} : memref<8x256xf32, #tpu.memory_space<vmem>>, vector<8x256xf32>,
    return
  }
  func.func @transform_0(%arg0: i32) -> (i32, i32) {
    %c0_i32 = arith.constant 0 : i32
    %c0_i32_0 = arith.constant 0 : i32
    return %arg0, %c0_i32 : i32, i32
  }
  func.func @transform_1(%arg0: i32) -> (i32, i32) {
    %c0_i32 = arith.constant 0 : i32
    %c0_i32_0 = arith.constant 0 : i32
    %c0_i32_1 = arith.constant 0 : i32
    return %c0_i32, %c0_i32_0 : i32, i32
  }
  func.func @transform_2(%arg0: i32) -> (i32, i32) {
    %c0_i32 = arith.constant 0 : i32
    %c0_i32_0 = arith.constant 0 : i32
    %c0_i32_1 = arith.constant 0 : i32
    return %c0_i32, %c0_i32_0 : i32, i32
  }
  func.func @transform_3(%arg0: i32) -> (i32, i32) {
    %c0_i32 = arith.constant 0 : i32
    %c0_i32_0 = arith.constant 0 : i32
    %c0_i32_1 = arith.constant 0 : i32
    return %c0_i32, %c0_i32_0 : i32, i32
  }
  func.func @transform_4(%arg0: i32) -> (i32, i32) {
    %c0_i32 = arith.constant 0 : i32
    %c0_i32_0 = arith.constant 0 : i32
    %c0_i32_1 = arith.constant 0 : i32
    return %c0_i32, %c0_i32_0 : i32, i32
  }
  func.func @transform_5(%arg0: i32) -> (i32, i32) {
    %c0_i32 = arith.constant 0 : i32
    %c0_i32_0 = arith.constant 0 : i32
    return %arg0, %c0_i32 : i32, i32
  }
  func.func @transform_6(%arg0: i32) -> (i32, i32) {
    %c0_i32 = arith.constant 0 : i32
    %c0_i32_0 = arith.constant 0 : i32
    return %arg0, %c0_i32 : i32, i32
  }
}

module attributes {stable_mosaic.version = 11 : i64} {
  func.func @_proj_resident_kernel(%arg0: i32, %arg1: memref<8x256xf32, #tpu.memory_space<vmem>>, %arg2: memref<256x256xbf16, #tpu.memory_space<vmem>>, %arg3: memref<1x256xf32, #tpu.memory_space<vmem>>, %arg4: memref<256x384xbf16, #tpu.memory_space<vmem>>, %arg5: memref<1x384xf32, #tpu.memory_space<vmem>>, %arg6: memref<8x256xf32, #tpu.memory_space<vmem>>, %arg7: memref<8x128xf32, #tpu.memory_space<vmem>>, %arg8: memref<8x256xbf16, #tpu.memory_space<vmem>>) attributes {dimension_semantics = [#tpu.dimension_semantics<parallel>], iteration_bounds = array<i64: 2>, scalar_prefetch = 0 : i64, scratch_operands = 1 : i64, tpu.core_type = #tpu.core_type<tc>, window_params = [{transform_indices = @transform_0, window_bounds = array<i64: 8, 256>}, {pipeline_mode = #tpu.pipeline_mode<synchronous>, transform_indices = @transform_1, window_bounds = array<i64: 256, 256>}, {pipeline_mode = #tpu.pipeline_mode<synchronous>, transform_indices = @transform_2, window_bounds = array<i64: 1, 256>}, {pipeline_mode = #tpu.pipeline_mode<synchronous>, transform_indices = @transform_3, window_bounds = array<i64: 256, 384>}, {pipeline_mode = #tpu.pipeline_mode<synchronous>, transform_indices = @transform_4, window_bounds = array<i64: 1, 384>}, {transform_indices = @transform_5, window_bounds = array<i64: 8, 256>}, {transform_indices = @transform_6, window_bounds = array<i64: 8, 128>}]} {
    %c0 = arith.constant 0 : index
    %c0_0 = arith.constant 0 : index
    %0 = vector.load %arg1[%c0, %c0_0] : memref<8x256xf32, #tpu.memory_space<vmem>>, vector<8x256xf32>
    %1 = arith.truncf %0 : vector<8x256xf32> to vector<8x256xbf16>
    %c0_1 = arith.constant 0 : index
    %c0_2 = arith.constant 0 : index
    %2 = vector.load %arg2[%c0_1, %c0_2] : memref<256x256xbf16, #tpu.memory_space<vmem>>, vector<256x256xbf16>
    %cst = arith.constant dense<0.000000e+00> : vector<8x256xf32>
    %3 = tpu.matmul %1, %2, %cst {dimension_numbers = #tpu.dot_dimension_numbers<[1], [0], [0], [1], [0, 0, 1, 1], [], []>} : vector<8x256xbf16>, vector<256x256xbf16>, vector<8x256xf32> -> vector<8x256xf32>
    %c0_3 = arith.constant 0 : index
    %c0_4 = arith.constant 0 : index
    %4 = vector.load %arg3[%c0_3, %c0_4] : memref<1x256xf32, #tpu.memory_space<vmem>>, vector<1x256xf32>
    %5 = vector.broadcast %4 : vector<1x256xf32> to vector<8x256xf32>
    %6 = arith.addf %3, %5 : vector<8x256xf32>
    %7 = arith.truncf %6 : vector<8x256xf32> to vector<8x256xbf16>
    %c0_5 = arith.constant 0 : index
    %c0_6 = arith.constant 0 : index
    %8 = vector.load %arg8[%c0_5, %c0_6] : memref<8x256xbf16, #tpu.memory_space<vmem>>, vector<8x256xbf16>
    tpu.vector_store %arg8[%c0_5, %c0_6], %7 {strides = array<i32>} : memref<8x256xbf16, #tpu.memory_space<vmem>>, vector<8x256xbf16>,
    %c0_7 = arith.constant 0 : index
    %c0_8 = arith.constant 0 : index
    %9 = vector.load %arg8[%c0_7, %c0_8] : memref<8x256xbf16, #tpu.memory_space<vmem>>, vector<8x256xbf16>
    %c0_9 = arith.constant 0 : index
    %c0_10 = arith.constant 0 : index
    %10 = vector.load %arg4[%c0_9, %c0_10] : memref<256x384xbf16, #tpu.memory_space<vmem>>, vector<256x128xbf16>
    %cst_11 = arith.constant dense<0.000000e+00> : vector<8x128xf32>
    %11 = tpu.matmul %9, %10, %cst_11 {dimension_numbers = #tpu.dot_dimension_numbers<[1], [0], [0], [1], [0, 0, 1, 1], [], []>} : vector<8x256xbf16>, vector<256x128xbf16>, vector<8x128xf32> -> vector<8x128xf32>
    %c0_12 = arith.constant 0 : index
    %c0_13 = arith.constant 0 : index
    %12 = vector.load %arg5[%c0_12, %c0_13] : memref<1x384xf32, #tpu.memory_space<vmem>>, vector<1x128xf32>
    %13 = vector.broadcast %12 : vector<1x128xf32> to vector<8x128xf32>
    %14 = arith.addf %11, %13 : vector<8x128xf32>
    %c0_14 = arith.constant 0 : index
    %c0_15 = arith.constant 0 : index
    %15 = vector.load %arg7[%c0_14, %c0_15] : memref<8x128xf32, #tpu.memory_space<vmem>>, vector<8x128xf32>
    tpu.vector_store %arg7[%c0_14, %c0_15], %14 {strides = array<i32>} : memref<8x128xf32, #tpu.memory_space<vmem>>, vector<8x128xf32>,
    %c0_16 = arith.constant 0 : index
    %c0_17 = arith.constant 0 : index
    %16 = vector.load %arg8[%c0_16, %c0_17] : memref<8x256xbf16, #tpu.memory_space<vmem>>, vector<8x256xbf16>
    %c0_18 = arith.constant 0 : index
    %c128 = arith.constant 128 : index
    %17 = vector.load %arg4[%c0_18, %c128] : memref<256x384xbf16, #tpu.memory_space<vmem>>, vector<256x256xbf16>
    %cst_19 = arith.constant dense<0.000000e+00> : vector<8x256xf32>
    %18 = tpu.matmul %16, %17, %cst_19 {dimension_numbers = #tpu.dot_dimension_numbers<[1], [0], [0], [1], [0, 0, 1, 1], [], []>} : vector<8x256xbf16>, vector<256x256xbf16>, vector<8x256xf32> -> vector<8x256xf32>
    %c0_20 = arith.constant 0 : index
    %c128_21 = arith.constant 128 : index
    %19 = vector.load %arg5[%c0_20, %c128_21] : memref<1x384xf32, #tpu.memory_space<vmem>>, vector<1x256xf32>
    %20 = vector.broadcast %19 : vector<1x256xf32> to vector<8x256xf32>
    %21 = arith.addf %18, %20 : vector<8x256xf32>
    %c0_22 = arith.constant 0 : index
    %c0_23 = arith.constant 0 : index
    %22 = vector.load %arg6[%c0_22, %c0_23] : memref<8x256xf32, #tpu.memory_space<vmem>>, vector<8x256xf32>
    tpu.vector_store %arg6[%c0_22, %c0_23], %21 {strides = array<i32>} : memref<8x256xf32, #tpu.memory_space<vmem>>, vector<8x256xf32>,
    return
  }
  func.func @transform_0(%arg0: i32) -> (i32, i32) {
    %c0_i32 = arith.constant 0 : i32
    %c0_i32_0 = arith.constant 0 : i32
    return %arg0, %c0_i32 : i32, i32
  }
  func.func @transform_1(%arg0: i32) -> (i32, i32) {
    %c0_i32 = arith.constant 0 : i32
    %c0_i32_0 = arith.constant 0 : i32
    %c0_i32_1 = arith.constant 0 : i32
    return %c0_i32, %c0_i32_0 : i32, i32
  }
  func.func @transform_2(%arg0: i32) -> (i32, i32) {
    %c0_i32 = arith.constant 0 : i32
    %c0_i32_0 = arith.constant 0 : i32
    %c0_i32_1 = arith.constant 0 : i32
    return %c0_i32, %c0_i32_0 : i32, i32
  }
  func.func @transform_3(%arg0: i32) -> (i32, i32) {
    %c0_i32 = arith.constant 0 : i32
    %c0_i32_0 = arith.constant 0 : i32
    %c0_i32_1 = arith.constant 0 : i32
    return %c0_i32, %c0_i32_0 : i32, i32
  }
  func.func @transform_4(%arg0: i32) -> (i32, i32) {
    %c0_i32 = arith.constant 0 : i32
    %c0_i32_0 = arith.constant 0 : i32
    %c0_i32_1 = arith.constant 0 : i32
    return %c0_i32, %c0_i32_0 : i32, i32
  }
  func.func @transform_5(%arg0: i32) -> (i32, i32) {
    %c0_i32 = arith.constant 0 : i32
    %c0_i32_0 = arith.constant 0 : i32
    return %arg0, %c0_i32 : i32, i32
  }
  func.func @transform_6(%arg0: i32) -> (i32, i32) {
    %c0_i32 = arith.constant 0 : i32
    %c0_i32_0 = arith.constant 0 : i32
    return %arg0, %c0_i32 : i32, i32
  }
}

</mosaic_0001>

<bundles_post_ra>
// kernel: tpu_custom_call.1
= control target key start
LH: loop header
LB: loop body
LE: loop exit
PB: predicated region body
PF: predicated region fallthrough
CT: control target
= control target key end

     0   :  { %12 = vsyncpa [#allocation4], 0  ;;  %s2148_s0 = inlined_call_operand.hbm [shape: f32[16,256], index: 0, kind: input, shape index: {}]   ;;  %s2149_s1 = inlined_call_operand.hbm [shape: bf16[256,256], index: 1, kind: input, shape index: {}]   ;;  %s2150_s2 = inlined_call_operand.hbm [shape: f32[1,256], index: 2, kind: input, shape index: {}]   ;;  %s2151_s3 = inlined_call_operand.hbm [shape: bf16[256,384], index: 3, kind: input, shape index: {}]   ;;  %s2152_s4 = inlined_call_operand.vmem [shape: f32[1,384], index: 4, kind: input, shape index: {}]   ;;  %s2153_s5 = inlined_call_operand.hbm [shape: f32[16,256], index: 5, kind: output, shape index: {0}]   ;;  %s2154_s6 = inlined_call_operand.hbm [shape: f32[16,128], index: 6, kind: output, shape index: {1}]  }
   0x1   :  { %14 = vsyncpa [#allocation4 + $0x1], 0 }
   0x2   :  { %15 = vsyncpa [#allocation7], 0 }
   0x3   :  { %16 = vsyncpa [#allocation10], 0 }
   0x4   :  { %17 = vsyncpa [#allocation5], 0 }
   0x5   :  { %19 = vsyncpa [#allocation5 + $0x1], 0 }
   0x6   :  { %20 = vsyncpa [#allocation13], 0 }
   0x7   :  { %22 = vsyncpa [#allocation13 + $0x1], 0  ;;  %s1962_s21 = smov 0   ;;  %s1964_s22 = smov 0  }
   0x8   :  { %s1966_s23 = smov 0   ;;  %s1968_s24 = smov 0  }
   0x9 LB: > { %s206_s27 = sshll.u32 %s2149_s1, 4  ;;  %s1986_s28 = sadd.s32 4294967295, %s1918_s24   ;;  %s1918_s24 = sphi %s1968_s24, %s2165_s24   ;;  %s1914_s23 = sphi %s1966_s23, %s2164_s23   ;;  %s1910_s22 = sphi %s1964_s22, %s2163_s22   ;;  %s1906_s21 = sphi %s1962_s21, %s2162_s21   ;;  %s207_s27 = int_to_ptr.hbm [resolvable:$true] %s206_s27 }
   0xa   : > { %p1181_p0 = scmp.ge.s32.totalorder %s1918_s24, 1  ;;  %p49_p1 = scmp.eq.s32.totalorder %s1986_s28, 0 }
   0xb   : > { %p195_p2 = scmp.lt.s32.totalorder %s1918_s24, 3  ;;  %s1920_s30 = smov [#allocation6]  }
   0xc   : > { %s208_s7 = sshll.u32 %s1920_s30, 4  ;;  %s221_s10 = sshll.u32 %s2150_s2, 4  ;;  %s209_s7 = int_to_ptr.vmem [resolvable:$true] %s208_s7  ;;  %s222_s10 = int_to_ptr.hbm [resolvable:$true] %s221_s10 }
   0xd   : > { %p1991_p3 = pnand %p1181_p0, %p195_p2  ;;  %s232_s14 = sshll.u32 %s2151_s3, 4  ;;  %s233_s14 = int_to_ptr.hbm [resolvable:$true] %s232_s14 }
   0xe   : > { %s1921_s15 = smov [#allocation8]   ;;  %s1922_s17 = smov 128  }
   0xf   : > { %p1623_p4 = pneg %p1991_p3  ;;  %s223_s16 = sshll.u32 %s1921_s15, 4  ;;  %s224_s16 = int_to_ptr.vmem [resolvable:$true] %s223_s16 }
  0x10   : > { %s1923_s18 = smov 8   ;;  %s1924_s19 = smov [#allocation9]  }
  0x11   : > { %p2003_p6 = pnand %p1623_p4, %p49_p1  ;;  %s234_s20 = sshll.u32 %s1924_s19, 4  ;;  %s235_s20 = int_to_ptr.vmem [resolvable:$true] %s234_s20 }
  0x12   : > { %s1925_s25 = smov 192   ;;  %s1926_s26 = smov 12  }
  0x13   : > { %1626 = dma.hbm_to_vmem [thread:$0]  (!%p2003_p6), %s207_s27, 4096, %s209_s7, [#allocation7], %s1922_s17, %s1922_s17, %s1923_s18  }
  0x14   : > { %1629 = dma.hbm_to_vmem [thread:$0]  (!%p2003_p6), %s222_s10, 32, %s224_s16, [#allocation7]  }
  0x15   : > { %1632 = dma.hbm_to_vmem [thread:$0]  (!%p2003_p6), %s233_s14, 6144, %s235_s20, [#allocation10], %s1925_s25, %s1925_s25, %s1926_s26  }
  0x16   : > { %s1180_s30 = sadd.s32 4294967294, %s1918_s24   ;;  %s2018_s27 = sadd.s32 1, %s1918_s24  }
  0x17   : > { %s35_s7 = sadd.s32 1, %s1914_s23  ;;  %s32_s8 = ssub.s32 %s1918_s24, %s2018_s27 }
  0x18   : > { %p42_p7 = scmp.ne.s32.totalorder %s1914_s23, %s1910_s22  ;;  %p33_p8 = scmp.eq.s32.totalorder %s32_s8, 0 }
  0x19   : > { %p43_p9 = scmp.eq.s32.totalorder %s1918_s24, 0  ;;  %p48_p10 = scmp.ne.s32.totalorder %s1910_s22, %s1906_s21 }
  0x1a   : > { %p156_p11 = scmp.eq.s32.totalorder %s1986_s28, 1  ;;  %p162_p0 = scmp.eq.s32.totalorder %s1180_s30, 1 }
  0x1b   : > { %s2030_s9 = scalar_select %p33_p8, %s1914_s23, %s35_s7  }
  0x1c   : > { %p2034_p12 = por %p49_p1, %p48_p10  ;;  %p2038_p13 = por %p156_p11, %p42_p7 }
  0x1d   : > { %p44_p2 = por %p43_p9, %p42_p7  ;;  %s251_s12 = sand.u32 1, %s1914_s23  }
  0x1e   : > { %p2043_p4 = por %p162_p0, %p48_p10  ;;  %p1647_p6 = scmp.lt.s32.totalorder %s1918_s24, 2 }
  0x1f   : > { %s1186_s14 = sshll.u32 %s251_s12, 4  ;;  %s1523_s15 = sshll.u32 %s1918_s24, 4 }
  0x20   : > { %s260_s18 = scalar_lea.hbm %s2148_s0, %s1523_s15  ;;  %s255_s20 = scalar_lea.vmem [#allocation3], %s1186_s14 }
  0x21   : > { %s262_s19 = sshll.u32 %s260_s18, 4  ;;  %s264_s25 = sshll.u32 %s255_s20, 4  ;;  %s263_s19 = int_to_ptr.hbm [resolvable:$true] %s262_s19  ;;  %s265_s25 = int_to_ptr.vmem [resolvable:$true] %s264_s25 }
  0x22   : > { %p2052_p8 = pnand %p1647_p6, %p44_p2  ;;  %s252_s30 = scalar_lea.sflag [#allocation4], %s251_s12 }
  0x23   : > { %s1782_s7 = sshra.s32 %s263_s19, 4  ;;  %s1789_s14 = scalar_lea.hbm %s2148_s0, 32  ;;  %s1783_s7 = int_to_ptr.hbm [resolvable:$true] %s1782_s7 }
  0x24   : > { %s1784_s8 = scalar_lea.hbm %s1783_s7, 16  ;;  %p1786_p9 = pneg %p2052_p8 }
  0x25   : > { %p1785_p7 = scmp.ne.s32.totalorder %s1783_s7, %s1784_s8  ;;  %p1790_p0 = scmp.lt.s32.totalorder %s1783_s7, %s2148_s0 }
  0x26   : > { %p1791_p2 = scmp.lt.s32.totalorder %s1789_s14, %s1784_s8 }
  0x27   : > { %p1787_p10 = pnand %p1786_p9, %p1785_p7 }
  0x28   : > { %p1792_p6 = por %p1791_p2, %p1790_p0 }
  0x29   : > { %p1788_p11 = pneg %p1787_p10 }
  0x2b   : > { %p1793_p5 = pnand %p1792_p6, %p1788_p11 }
  0x2d   : > { %1796 = shalt.err (!%p1793_p5)
}
  0x2e   : > { %1636 = dma.hbm_to_vmem [thread:$0]  (!%p2052_p8), %s263_s19, 256, %s265_s25, %s252_s30  }
  0x2f   : > { %273 = sbr.rel (%p1991_p3) target bundleno = 385 (0x181), region = 40  ;;  %s2069_s12 = sand.u32 (!%p1991_p3), 1, %s1910_s22  }
  0x30   : > { %s1190_s20 = sshll.u32 (!%p1991_p3), %s2069_s12, 4  ;;  %s276_s15 = scalar_lea.sflag (!%p1991_p3), [#allocation4], %s2069_s12 }
  0x31   : > { %s2075_s7 = scalar_lea.vmem (!%p1991_p3), [#allocation3], %s1190_s20 }
  0x34   : > { %1885 = dma.done.wait (%p2034_p12), %s276_s15, 256  }
  0x35   : > { %1887 = vsyncadd (%p2034_p12), %s276_s15, 4294967040 }
  0x36   : > { %1889 = dma.done.wait (%p49_p1), [#allocation7], 4128  }
  0x37   : > { %1891 = vsyncadd (%p49_p1), [#allocation7], 4294963168 }
  0x38   : > { %1893 = dma.done.wait (%p49_p1), [#allocation10], 6144  }
  0x39   : > { %1895 = vsyncadd (%p49_p1), [#allocation10], 4294961152  ;;  %v1254_v0 = vld [vmem:[#allocation6 + $0x70] sm:$0xf]  ;;  %v1539_v1 = vld [vmem:[#allocation6 + $0x74] sm:$0xf0] }
  0x3a   : > { %v1318_v2 = vld [vmem:[#allocation6 + $0xf0] sm:$0xf]  ;;  %v1255_v3 = vor.u32 %v1539_v1, %v1254_v0  ;;  %v1555_v4 = vld [vmem:[#allocation6 + $0xf4] sm:$0xf0]  ;;  %v1538_v5 = vld [vmem:[#allocation6 + $0x74] sm:$0xf] }
  0x3b   : > { %v1256_v6 = vld [vmem:[#allocation6 + $0x78] sm:$0xf0]  ;;  %v1319_v7 = vor.u32 %v1555_v4, %v1318_v2  ;;  %v1554_v9 = vld [vmem:[#allocation6 + $0xf4] sm:$0xf]  ;;  %v1246_v11 = vld [vmem:[#allocation6 + $0x60] sm:$0xf] }
  0x3c   : > { %v1259_v8 = vor.u32 %v1538_v5, %v1256_v6  ;;  %v1320_v10 = vld [vmem:[#allocation6 + $0xf8] sm:$0xf0]  ;;  %531 = vmatpush.bf16.msra.mxu0 %v1255_v3  ;;  %v1537_v13 = vld [vmem:[#allocation6 + $0x64] sm:$0xf0]  ;;  %v1310_v14 = vld [vmem:[#allocation6 + $0xe0] sm:$0xf] }
  0x3d   : > { %v1323_v12 = vor.u32 %v1554_v9, %v1320_v10  ;;  %v1553_v15 = vld [vmem:[#allocation6 + $0xe4] sm:$0xf0]  ;;  %544 = vmatpush.bf16.msra.mxu1 %v1319_v7  ;;  %v1247_v16 = vor.u32 %v1537_v13, %v1246_v11  ;;  %v1536_v18 = vld [vmem:[#allocation6 + $0x64] sm:$0xf]  ;;  %v1248_v19 = vld [vmem:[#allocation6 + $0x68] sm:$0xf0] }
  0x3e   : > { %557 = vmatpush.bf16.msra.mxu2 %v1259_v8  ;;  %v1311_v17 = vor.u32 %v1553_v15, %v1310_v14  ;;  %v1552_v20 = vld [vmem:[#allocation6 + $0xe4] sm:$0xf]  ;;  %v1251_v21 = vor.u32 %v1536_v18, %v1248_v19  ;;  %v1312_v22 = vld [vmem:[#allocation6 + $0xe8] sm:$0xf0]  ;;  %v1238_v23 = vld [vmem:[#allocation6 + $0x50] sm:$0xf] }
  0x3f   : > { %570 = vmatpush.bf16.msra.mxu3 %v1323_v12  ;;  %v1535_v24 = vld [vmem:[#allocation6 + $0x54] sm:$0xf0]  ;;  %v1315_v25 = vor.u32 %v1552_v20, %v1312_v22  ;;  %v1302_v26 = vld [vmem:[#allocation6 + $0xd0] sm:$0xf]  ;;  %v1534_v28 = vld [vmem:[#allocation6 + $0x54] sm:$0xf] }
  0x40   : > { %v1551_v27 = vld [vmem:[#allocation6 + $0xd4] sm:$0xf0]  ;;  %532 = vmatpush.bf16.msra.mxu0 %v1247_v16  ;;  %v1239_v29 = vor.u32 %v1535_v24, %v1238_v23  ;;  %v1240_v30 = vld [vmem:[#allocation6 + $0x58] sm:$0xf0]  ;;  %v1550_v31 = vld [vmem:[#allocation6 + $0xd4] sm:$0xf] }
  0x41   : > { %v1304_v32 = vld [vmem:[#allocation6 + $0xd8] sm:$0xf0]  ;;  %545 = vmatpush.bf16.msra.mxu1 %v1311_v17  ;;  %v1303_v33 = vor.u32 %v1551_v27, %v1302_v26  ;;  %v1243_v34 = vor.u32 %v1534_v28, %v1240_v30  ;;  %v1230_v35 = vld [vmem:[#allocation6 + $0x40] sm:$0xf]  ;;  %v1533_v36 = vld [vmem:[#allocation6 + $0x44] sm:$0xf0] }
  0x42   : > { %558 = vmatpush.bf16.msra.mxu2 %v1251_v21  ;;  %v1294_v37 = vld [vmem:[#allocation6 + $0xc0] sm:$0xf]  ;;  %v1307_v38 = vor.u32 %v1550_v31, %v1304_v32  ;;  %v1549_v39 = vld [vmem:[#allocation6 + $0xc4] sm:$0xf0]  ;;  %v1532_v40 = vld [vmem:[#allocation6 + $0x44] sm:$0xf]  ;;  %v1231_v44 = vor.u32 %v1533_v36, %v1230_v35 }
  0x43   : > { %571 = vmatpush.bf16.msra.mxu3 %v1315_v25  ;;  %v1232_v41 = vld [vmem:[#allocation6 + $0x48] sm:$0xf0]  ;;  %v1548_v42 = vld [vmem:[#allocation6 + $0xc4] sm:$0xf]  ;;  %v1295_v45 = vor.u32 %v1549_v39, %v1294_v37  ;;  %v1222_v47 = vld [vmem:[#allocation6 + $0x30] sm:$0xf] }
  0x44   : > { %v1296_v43 = vld [vmem:[#allocation6 + $0xc8] sm:$0xf0]  ;;  %533 = vmatpush.bf16.msra.mxu0 %v1239_v29  ;;  %v1235_v46 = vor.u32 %v1532_v40, %v1232_v41  ;;  %v1531_v48 = vld [vmem:[#allocation6 + $0x34] sm:$0xf0]  ;;  %v1286_v49 = vld [vmem:[#allocation6 + $0xb0] sm:$0xf] }
  0x45   : > { %546 = vmatpush.bf16.msra.mxu1 %v1303_v33  ;;  %v1299_v50 = vor.u32 %v1548_v42, %v1296_v43  ;;  %v1547_v51 = vld [vmem:[#allocation6 + $0xb4] sm:$0xf0]  ;;  %v1530_v52 = vld [vmem:[#allocation6 + $0x34] sm:$0xf]  ;;  %v1224_v53 = vld [vmem:[#allocation6 + $0x38] sm:$0xf0]  ;;  %v1223_v56 = vor.u32 %v1531_v48, %v1222_v47 }
  0x46   : > { %559 = vmatpush.bf16.msra.mxu2 %v1243_v34  ;;  %v1546_v54 = vld [vmem:[#allocation6 + $0xb4] sm:$0xf]  ;;  %v1288_v55 = vld [vmem:[#allocation6 + $0xb8] sm:$0xf0]  ;;  %v1287_v57 = vor.u32 %v1547_v51, %v1286_v49  ;;  %v1227_v58 = vor.u32 %v1530_v52, %v1224_v53  ;;  %v1214_v59 = vld [vmem:[#allocation6 + $0x20] sm:$0xf] }
  0x47   : > { %572 = vmatpush.bf16.msra.mxu3 %v1307_v38  ;;  %v1529_v60 = vld [vmem:[#allocation6 + $0x24] sm:$0xf0]  ;;  %v1278_v61 = vld [vmem:[#allocation6 + $0xa0] sm:$0xf]  ;;  %v1291_v62 = vor.u32 %v1546_v54, %v1288_v55  ;;  %v1528_v0 = vld [vmem:[#allocation6 + $0x24] sm:$0xf] }
  0x48   : > { %534 = vmatpush.bf16.msra.mxu0 %v1231_v44  ;;  %v1545_v63 = vld [vmem:[#allocation6 + $0xa4] sm:$0xf0]  ;;  %v1216_v1 = vld [vmem:[#allocation6 + $0x28] sm:$0xf0]  ;;  %v1544_v2 = vld [vmem:[#allocation6 + $0xa4] sm:$0xf]  ;;  %v1215_v4 = vor.u32 %v1529_v60, %v1214_v59 }
  0x49   : > { %547 = vmatpush.bf16.msra.mxu1 %v1295_v45  ;;  %v1280_v3 = vld [vmem:[#allocation6 + $0xa8] sm:$0xf0]  ;;  %v1279_v5 = vor.u32 %v1545_v63, %v1278_v61  ;;  %v1219_v6 = vor.u32 %v1528_v0, %v1216_v1  ;;  %v1206_v7 = vld [vmem:[#allocation6 + $0x10] sm:$0xf]  ;;  %v1527_v8 = vld [vmem:[#allocation6 + $0x14] sm:$0xf0] }
  0x4a   : > { %560 = vmatpush.bf16.msra.mxu2 %v1235_v46  ;;  %v1270_v9 = vld [vmem:[#allocation6 + $0x90] sm:$0xf]  ;;  %v1283_v10 = vor.u32 %v1544_v2, %v1280_v3  ;;  %v1543_v11 = vld [vmem:[#allocation6 + $0x94] sm:$0xf0]  ;;  %v1526_v12 = vld [vmem:[#allocation6 + $0x14] sm:$0xf]  ;;  %v1207_v16 = vor.u32 %v1527_v8, %v1206_v7 }
  0x4b   : > { %573 = vmatpush.bf16.msra.mxu3 %v1299_v50  ;;  %v1208_v13 = vld [vmem:[#allocation6 + $0x18] sm:$0xf0]  ;;  %v1542_v14 = vld [vmem:[#allocation6 + $0x94] sm:$0xf]  ;;  %v1198_v17 = vld [vmem:[#allocation6] sm:$0xf]  ;;  %v1271_v18 = vor.u32 %v1543_v11, %v1270_v9 }
  0x4c   : > { %535 = vmatpush.bf16.msra.mxu0 %v1223_v56  ;;  %v1272_v15 = vld [vmem:[#allocation6 + $0x98] sm:$0xf0]  ;;  %v1211_v19 = vor.u32 %v1526_v12, %v1208_v13  ;;  %v1525_v20 = vld [vmem:[#allocation6 + $0x4] sm:$0xf0]  ;;  %v1262_v21 = vld [vmem:[#allocation6 + $0x80] sm:$0xf] }
  0x4d   : > { %548 = vmatpush.bf16.msra.mxu1 %v1287_v57  ;;  %v1541_v22 = vld [vmem:[#allocation6 + $0x84] sm:$0xf0]  ;;  %v1275_v23 = vor.u32 %v1542_v14, %v1272_v15  ;;  %v1524_v24 = vld [vmem:[#allocation6 + $0x4] sm:$0xf]  ;;  %v1200_v25 = vld [vmem:[#allocation6 + $0x8] sm:$0xf0]  ;;  %v1199_v30 = vor.u32 %v1525_v20, %v1198_v17 }
  0x4e   : > { %561 = vmatpush.bf16.msra.mxu2 %v1227_v58  ;;  %v1540_v26 = vld [vmem:[#allocation6 + $0x84] sm:$0xf]  ;;  %v1264_v27 = vld [vmem:[#allocation6 + $0x88] sm:$0xf0]  ;;  %v1563_v29 = vld [vmem:[#allocation9 + $0xb0] sm:$0xf0]  ;;  %v1263_v34 = vor.u32 %v1541_v22, %v1262_v21  ;;  %v1203_v35 = vor.u32 %v1524_v24, %v1200_v25 }
  0x4f   : > { %574 = vmatpush.bf16.msra.mxu3 %v1291_v62  ;;  %v1354_v28 = vld [vmem:[#allocation9 + $0xa8] sm:$0xf]  ;;  %v329_v31 = vld [vmem:[%s2075_s7] sm:$0xff]  ;;  %v1267_v37 = vor.u32 %v1540_v26, %v1264_v27  ;;  %v1587_v41 = vld [vmem:[#allocation9 + $0xb4] sm:$0xf0]  ;;  %s1520_s29 = sshll.u32 %s1986_s28, 3 }
  0x50   : > { %536 = vmatpush.bf16.msra.mxu0 %v1215_v4  ;;  %v1386_v32 = vld [vmem:[#allocation9 + $0x168] sm:$0xf]  ;;  %v1571_v33 = vld [vmem:[#allocation9 + $0x170] sm:$0xf0]  ;;  %v1355_v38 = vor.u32 %v1563_v29, %v1354_v28  ;;  %v1350_v39 = vld [vmem:[#allocation9 + $0x90] sm:$0xf]  ;;  %v331_v42 = vpack.c.bf16 %v329_v31, %v329_v31  ;;  %s1043_s8 = scalar_lea.hbm %s2154_s6, %s1520_s29 }
  0x51   : > { %549 = vmatpush.bf16.msra.mxu1 %v1279_v5  ;;  %v330_v36 = vld [vmem:[%s2075_s7 + $0x8] sm:$0xff]  ;;  %v1387_v43 = vor.u32 %v1571_v33, %v1386_v32  ;;  %v1382_v48 = vld [vmem:[#allocation9 + $0x150] sm:$0xf]  ;;  %v1585_v55 = vld [vmem:[#allocation9 + $0x9c] sm:$0xf0]  ;;  %s1195_s10 = sshll.u32 %s2069_s12, 3 }
  0x52   : > { %562 = vmatpush.bf16.msra.mxu2 %v1219_v6  ;;  %v1446_v40 = vld [vmem:[#allocation9 + $0xac] sm:$0xf]  ;;  %v1562_v44 = vld [vmem:[#allocation9 + $0x98] sm:$0xf0]  ;;  %v1603_v46 = vld [vmem:[#allocation9 + $0x174] sm:$0xf0]  ;;  %v332_v47 = vpack.c.bf16 %v330_v36, %v330_v36 }
  0x53   : > { %575 = vmatpush.bf16.msra.mxu3 %v1283_v10  ;;  %v1510_v45 = vld [vmem:[#allocation9 + $0x16c] sm:$0xf]  ;;  %v1570_v49 = vld [vmem:[#allocation9 + $0x158] sm:$0xf0]  ;;  %v1447_v50 = vor.u32 %v1587_v41, %v1446_v40  ;;  %v1351_v51 = vor.u32 %v1562_v44, %v1350_v39  ;;  %v1346_v52 = vld [vmem:[#allocation9 + $0x78] sm:$0xf] }
  0x54   : > { %537 = vmatpush.bf16.msra.mxu0 %v1207_v16  ;;  %v1511_v53 = vor.u32 %v1603_v46, %v1510_v45  ;;  %v1438_v54 = vld [vmem:[#allocation9 + $0x94] sm:$0xf]  ;;  %v1383_v56 = vor.u32 %v1570_v49, %v1382_v48  ;;  %v1561_v57 = vld [vmem:[#allocation9 + $0x80] sm:$0xf0]  ;;  %v1601_v59 = vld [vmem:[#allocation9 + $0x15c] sm:$0xf0] }
  0x55   : > { %550 = vmatpush.bf16.msra.mxu1 %v1271_v18  ;;  %v1502_v58 = vld [vmem:[#allocation9 + $0x154] sm:$0xf]  ;;  %v1378_v60 = vld [vmem:[#allocation9 + $0x138] sm:$0xf]  ;;  %v1569_v61 = vld [vmem:[#allocation9 + $0x140] sm:$0xf0]  ;;  %v1439_v63 = vor.u32 %v1585_v55, %v1438_v54  ;;  %v1347_v0 = vor.u32 %v1561_v57, %v1346_v52 }
  0x56   : > { %563 = vmatpush.bf16.msra.mxu2 %v1211_v19  ;;  %v1342_v62 = vld [vmem:[#allocation9 + $0x60] sm:$0xf]  ;;  %v1503_v1 = vor.u32 %v1601_v59, %v1502_v58  ;;  %v1430_v2 = vld [vmem:[#allocation9 + $0x7c] sm:$0xf]  ;;  %v1583_v3 = vld [vmem:[#allocation9 + $0x84] sm:$0xf0]  ;;  %v1379_v4 = vor.u32 %v1569_v61, %v1378_v60 }
  0x57   : > { %576 = vmatpush.bf16.msra.mxu3 %v1275_v23  ;;  %v1560_v5 = vld [vmem:[#allocation9 + $0x68] sm:$0xf0]  ;;  %v1494_v6 = vld [vmem:[#allocation9 + $0x13c] sm:$0xf]  ;;  %v1599_v7 = vld [vmem:[#allocation9 + $0x144] sm:$0xf0]  ;;  %v1431_v10 = vor.u32 %v1583_v3, %v1430_v2 }
  0x58   : > { %538 = vmatpush.bf16.msra.mxu0 %v1199_v30  ;;  %v1374_v8 = vld [vmem:[#allocation9 + $0x120] sm:$0xf]  ;;  %v1568_v9 = vld [vmem:[#allocation9 + $0x128] sm:$0xf0]  ;;  %v1343_v11 = vor.u32 %v1560_v5, %v1342_v62  ;;  %v1338_v12 = vld [vmem:[#allocation9 + $0x48] sm:$0xf]  ;;  %v1495_v13 = vor.u32 %v1599_v7, %v1494_v6 }
  0x59   : > { %551 = vmatpush.bf16.msra.mxu1 %v1263_v34  ;;  %v1422_v14 = vld [vmem:[#allocation9 + $0x64] sm:$0xf]  ;;  %v1581_v15 = vld [vmem:[#allocation9 + $0x6c] sm:$0xf0]  ;;  %v1375_v16 = vor.u32 %v1568_v9, %v1374_v8  ;;  %v1559_v17 = vld [vmem:[#allocation9 + $0x50] sm:$0xf0] }
  0x5a   : > { %564 = vmatpush.bf16.msra.mxu2 %v1203_v35  ;;  %v1486_v18 = vld [vmem:[#allocation9 + $0x124] sm:$0xf]  ;;  %v1597_v19 = vld [vmem:[#allocation9 + $0x12c] sm:$0xf0]  ;;  %v1370_v20 = vld [vmem:[#allocation9 + $0x108] sm:$0xf]  ;;  %v1423_v22 = vor.u32 %v1581_v15, %v1422_v14  ;;  %v1339_v23 = vor.u32 %v1559_v17, %v1338_v12 }
  0x5b   : > { %577 = vmatpush.bf16.msra.mxu3 %v1267_v37  ;;  %539 = vmatmul.bf16.vlgmr.msra.gmra.mxu0 %v331_v42  ;;  %v1567_v21 = vld [vmem:[#allocation9 + $0x110] sm:$0xf0]  ;;  %v1487_v24 = vor.u32 %v1597_v19, %v1486_v18  ;;  %v1334_v26 = vld [vmem:[#allocation9 + $0x30] sm:$0xf]  ;;  %v1558_v27 = vld [vmem:[#allocation9 + $0x38] sm:$0xf0] }
  0x5c   : > { %725 = vmatpush.bf16.msrb.mxu0 %v1355_v38  ;;  %552 = vmatmul.bf16.vlgmr.msra.gmra.mxu1 %v332_v47  ;;  %v1371_v25 = vor.u32 %v1567_v21, %v1370_v20  ;;  %v1366_v28 = vld [vmem:[#allocation9 + $0xf0] sm:$0xf]  ;;  %v1566_v29 = vld [vmem:[#allocation9 + $0xf8] sm:$0xf0]  ;;  %v1335_v30 = vor.u32 %v1558_v27, %v1334_v26  ;;  %v1330_v32 = vld [vmem:[#allocation9 + $0x18] sm:$0xf] }
  0x5d   : > { %738 = vmatpush.bf16.msrb.mxu1 %v1387_v43  ;;  %565 = vmatmul.bf16.vlgmr.msra.gmra.mxu2 %v331_v42  ;;  %v1367_v31 = vor.u32 %v1566_v29, %v1366_v28  ;;  %v1557_v33 = vld [vmem:[#allocation9 + $0x20] sm:$0xf0]  ;;  %v1362_v34 = vld [vmem:[#allocation9 + $0xd8] sm:$0xf]  ;;  %v1326_v38 = vld [vmem:[#allocation9] sm:$0xf] }
  0x5e   : > { %578 = vmatmul.bf16.vlgmr.msra.gmra.mxu3 %v332_v47  ;;  %958 = vmatpush.bf16.msrb.mxu2 %v1447_v50  ;;  %v1565_v35 = vld [vmem:[#allocation9 + $0xe0] sm:$0xf0]  ;;  %v1331_v36 = vor.u32 %v1557_v33, %v1330_v32  ;;  %v1556_v39 = vld [vmem:[#allocation9 + $0x8] sm:$0xf0]  ;;  %v1358_v40 = vld [vmem:[#allocation9 + $0xc0] sm:$0xf] }
  0x5f   : > { %971 = vmatpush.bf16.msrb.mxu3 %v1511_v53  ;;  %v1363_v37 = vor.u32 %v1565_v35, %v1362_v34  ;;  %v1327_v41 = vor.u32 %v1556_v39, %v1326_v38  ;;  %v1564_v42 = vld [vmem:[#allocation9 + $0xc8] sm:$0xf0]  ;;  %v1579_v44 = vld [vmem:[#allocation9 + $0x54] sm:$0xf0]  ;;  %v1586_v49 = vld [vmem:[#allocation9 + $0xb0] sm:$0xf] }
  0x60   : > { %726 = vmatpush.bf16.msrb.mxu0 %v1351_v51  ;;  %v1414_v43 = vld [vmem:[#allocation9 + $0x4c] sm:$0xf]  ;;  %v1359_v45 = vor.u32 %v1564_v42, %v1358_v40  ;;  %v1595_v48 = vld [vmem:[#allocation9 + $0x114] sm:$0xf0]  ;;  %v1448_v51 = vld [vmem:[#allocation9 + $0xb8] sm:$0xf0] }
  0x61   : > { %739 = vmatpush.bf16.msrb.mxu1 %v1383_v56  ;;  %v1415_v46 = vor.u32 %v1579_v44, %v1414_v43  ;;  %v1478_v47 = vld [vmem:[#allocation9 + $0x10c] sm:$0xf]  ;;  %v1602_v52 = vld [vmem:[#allocation9 + $0x170] sm:$0xf]  ;;  %v1512_v53 = vld [vmem:[#allocation9 + $0x178] sm:$0xf0]  ;;  %v1451_v54 = vor.u32 %v1586_v49, %v1448_v51 }
  0x62   : > { %959 = vmatpush.bf16.msrb.mxu2 %v1439_v63  ;;  %v1479_v50 = vor.u32 %v1595_v48, %v1478_v47  ;;  %v1515_v55 = vor.u32 %v1602_v52, %v1512_v53  ;;  %v1406_v56 = vld [vmem:[#allocation9 + $0x34] sm:$0xf]  ;;  %v1577_v57 = vld [vmem:[#allocation9 + $0x3c] sm:$0xf0]  ;;  %v1584_v61 = vld [vmem:[#allocation9 + $0x98] sm:$0xf] }
  0x63   : > { %972 = vmatpush.bf16.msrb.mxu3 %v1503_v1  ;;  %v1470_v58 = vld [vmem:[#allocation9 + $0xf4] sm:$0xf]  ;;  %v1407_v59 = vor.u32 %v1577_v57, %v1406_v56  ;;  %v1593_v60 = vld [vmem:[#allocation9 + $0xfc] sm:$0xf0]  ;;  %v1440_v62 = vld [vmem:[#allocation9 + $0xa0] sm:$0xf0] }
  0x64   : > { %727 = vmatpush.bf16.msrb.mxu0 %v1347_v0  ;;  %v1471_v63 = vor.u32 %v1593_v60, %v1470_v58  ;;  %v1443_v0 = vor.u32 %v1584_v61, %v1440_v62  ;;  %v1600_v1 = vld [vmem:[#allocation9 + $0x158] sm:$0xf]  ;;  %v1504_v2 = vld [vmem:[#allocation9 + $0x160] sm:$0xf0]  ;;  %v1575_v5 = vld [vmem:[#allocation9 + $0x24] sm:$0xf0] }
  0x65   : > { %740 = vmatpush.bf16.msrb.mxu1 %v1379_v4  ;;  %v1507_v3 = vor.u32 %v1600_v1, %v1504_v2  ;;  %v1398_v4 = vld [vmem:[#allocation9 + $0x1c] sm:$0xf]  ;;  %v1591_v8 = vld [vmem:[#allocation9 + $0xe4] sm:$0xf0]  ;;  %v1582_v9 = vld [vmem:[#allocation9 + $0x80] sm:$0xf] }
  0x66   : > { %960 = vmatpush.bf16.msrb.mxu2 %v1431_v10  ;;  %v1462_v6 = vld [vmem:[#allocation9 + $0xdc] sm:$0xf]  ;;  %v1399_v7 = vor.u32 %v1575_v5, %v1398_v4  ;;  %v1432_v10 = vld [vmem:[#allocation9 + $0x88] sm:$0xf0]  ;;  %v1573_v17 = vld [vmem:[#allocation9 + $0xc] sm:$0xf0] }
  0x67   : > { %973 = vmatpush.bf16.msrb.mxu3 %v1495_v13  ;;  %v1435_v12 = vor.u32 %v1582_v9, %v1432_v10  ;;  %v1598_v13 = vld [vmem:[#allocation9 + $0x140] sm:$0xf]  ;;  %v1496_v14 = vld [vmem:[#allocation9 + $0x148] sm:$0xf0]  ;;  %v1454_v18 = vld [vmem:[#allocation9 + $0xc4] sm:$0xf] }
  0x68   : > { %728 = vmatpush.bf16.msrb.mxu0 %v1343_v11  ;;  %v1463_v11 = vor.u32 %v1591_v8, %v1462_v6  ;;  %v1499_v15 = vor.u32 %v1598_v13, %v1496_v14  ;;  %v1589_v20 = vld [vmem:[#allocation9 + $0xcc] sm:$0xf0]  ;;  %v1580_v21 = vld [vmem:[#allocation9 + $0x68] sm:$0xf]  ;;  %v1488_v26 = vld [vmem:[#allocation9 + $0x130] sm:$0xf0] }
  0x69   : > { %741 = vmatpush.bf16.msrb.mxu1 %v1375_v16  ;;  %v1390_v16 = vld [vmem:[#allocation9 + $0x4] sm:$0xf]  ;;  %v1578_v28 = vld [vmem:[#allocation9 + $0x50] sm:$0xf]  ;;  %v1416_v29 = vld [vmem:[#allocation9 + $0x58] sm:$0xf0] }
  0x6a   : > { %961 = vmatpush.bf16.msrb.mxu2 %v1423_v22  ;;  %v1391_v19 = vor.u32 %v1573_v17, %v1390_v16  ;;  %v1424_v22 = vld [vmem:[#allocation9 + $0x70] sm:$0xf0]  ;;  %v1480_v32 = vld [vmem:[#allocation9 + $0x118] sm:$0xf0]  ;;  %v1576_v34 = vld [vmem:[#allocation9 + $0x38] sm:$0xf] }
  0x6b   : > { %974 = vmatpush.bf16.msrb.mxu3 %v1487_v24  ;;  %v1427_v24 = vor.u32 %v1580_v21, %v1424_v22  ;;  %v1408_v35 = vld [vmem:[#allocation9 + $0x40] sm:$0xf0]  ;;  %v1574_v40 = vld [vmem:[#allocation9 + $0x20] sm:$0xf]  ;;  %v1464_v43 = vld [vmem:[#allocation9 + $0xe8] sm:$0xf0] }
  0x6c   : > { %729 = vmatpush.bf16.msrb.mxu0 %v1339_v23  ;;  %v1455_v23 = vor.u32 %v1589_v20, %v1454_v18  ;;  %v1411_v38 = vor.u32 %v1576_v34, %v1408_v35  ;;  %v1590_v42 = vld [vmem:[#allocation9 + $0xe0] sm:$0xf]  ;;  %v1392_v47 = vld [vmem:[#allocation9 + $0x10] sm:$0xf0]  ;;  %v1588_v48 = vld [vmem:[#allocation9 + $0xc8] sm:$0xf] }
  0x6d   : > { %742 = vmatpush.bf16.msrb.mxu1 %v1371_v25  ;;  %v1596_v25 = vld [vmem:[#allocation9 + $0x128] sm:$0xf]  ;;  %v1456_v49 = vld [vmem:[#allocation9 + $0xd0] sm:$0xf0]  ;;  %v1691_v8 = vld [vmem:[%s2152_s4] ss:$0 sm:$0xff] }
  0x6e   : > { %962 = vmatpush.bf16.msrb.mxu2 %v1415_v46  ;;  %v1491_v27 = vor.u32 %v1596_v25, %v1488_v26  ;;  %v1572_v46 = vld [vmem:[#allocation9 + $0x8] sm:$0xf]  ;;  %v1459_v52 = vor.u32 %v1588_v48, %v1456_v49  ;;  %s328_s16 = scalar_lea.vmem [#allocation12], %s1195_s10  ;;  %s1047_s17 = sshll.u32 %s1043_s8, 4  ;;  %s1048_s17 = int_to_ptr.hbm [resolvable:$true] %s1047_s17 }
  0x6f   : > { %975 = vmatpush.bf16.msrb.mxu3 %v1479_v50  ;;  %v365_v50 = vld [vmem:[#allocation8] sm:$0x3]  ;;  %v1395_v51 = vor.u32 %v1572_v46, %v1392_v47  ;;  %s1045_s14 = sshll.u32 %s328_s16, 4  ;;  %s1018_s7 = scalar_lea.sflag [#allocation13], %s2069_s12  ;;  %s1046_s14 = int_to_ptr.vmem [resolvable:$true] %s1045_s14 }
  0x70   : > { %730 = vmatpush.bf16.msrb.mxu0 %v1335_v30  ;;  %v1594_v30 = vld [vmem:[#allocation9 + $0x110] sm:$0xf]  ;;  %v367_v53 = vperm.slane %v365_v50, 0  ;;  %v368_v57 = vperm.slane %v365_v50, 1  ;;  %s1826_s19 = sshra.s32 %s1048_s17, 4  ;;  %s1832_s26 = scalar_lea.hbm %s2154_s6, 16  ;;  %s1827_s19 = int_to_ptr.hbm [resolvable:$true] %s1826_s19 }
  0x71   : > { %743 = vmatpush.bf16.msrb.mxu1 %v1367_v31  ;;  %v1419_v31 = vor.u32 %v1578_v28, %v1416_v29  ;;  %v1483_v33 = vor.u32 %v1594_v30, %v1480_v32  ;;  %s1828_s29 = scalar_lea.hbm %s1827_s19, 8  ;;  %p1833_p12 = scmp.lt.s32.totalorder %s1827_s19, %s2154_s6 }
  0x72   : > { %963 = vmatpush.bf16.msrb.mxu2 %v1407_v59  ;;  %p1829_p1 = scmp.ne.s32.totalorder %s1827_s19, %s1828_s29  ;;  %p1834_p8 = scmp.lt.s32.totalorder %s1832_s26, %s1828_s29 }
  0x73   : > { %976 = vmatpush.bf16.msrb.mxu3 %v1471_v63 }
  0x74   : > { %731 = vmatpush.bf16.msrb.mxu0 %v1331_v36  ;;  %v1592_v36 = vld [vmem:[#allocation9 + $0xf8] sm:$0xf]  ;;  %p1830_p3 = pnand %p1829_p1, %p2038_p13  ;;  %p1835_p7 = por %p1834_p8, %p1833_p12 }
  0x75   : > { %744 = vmatpush.bf16.msrb.mxu1 %v1363_v37  ;;  %v1472_v37 = vld [vmem:[#allocation9 + $0x100] sm:$0xf0] }
  0x76   : > { %964 = vmatpush.bf16.msrb.mxu2 %v1399_v7  ;;  %v1475_v39 = vor.u32 %v1592_v36, %v1472_v37  ;;  %p1831_p5 = pneg %p1830_p3 }
  0x77   : > { %977 = vmatpush.bf16.msrb.mxu3 %v1463_v11 }
  0x78   : > { %732 = vmatpush.bf16.msrb.mxu0 %v1327_v41  ;;  %v1400_v41 = vld [vmem:[#allocation9 + $0x28] sm:$0xf0]  ;;  %p1836_p9 = pnand %p1835_p7, %p1831_p5 }
  0x79   : > { %745 = vmatpush.bf16.msrb.mxu1 %v1359_v45  ;;  %v1403_v44 = vor.u32 %v1574_v40, %v1400_v41  ;;  %v1467_v45 = vor.u32 %v1590_v42, %v1464_v43 }
  0x7a   : > { %965 = vmatpush.bf16.msrb.mxu2 %v1391_v19 }
  0x7b   : > { %978 = vmatpush.bf16.msrb.mxu3 %v1455_v23 }
  0x7c   : > { %984 = vmatpush.bf16.msra.mxu0 %v1451_v54 }
  0x7d   : > { %997 = vmatpush.bf16.msra.mxu1 %v1515_v55 }
  0x80   : > { %985 = vmatpush.bf16.msra.mxu0 %v1443_v0 }
  0x81   : > { %998 = vmatpush.bf16.msra.mxu1 %v1507_v3 }
  0x84   : > { %986 = vmatpush.bf16.msra.mxu0 %v1435_v12  ;;  %v785_v12 = vld [vmem:[%s2152_s4 + $0x1] sm:$0x3] }
  0x85   : > { %999 = vmatpush.bf16.msra.mxu1 %v1499_v15  ;;  %v787_v14 = vperm.slane %v785_v12, 0 }
  0x88   : > { %987 = vmatpush.bf16.msra.mxu0 %v1427_v24 }
  0x89   : > { %1000 = vmatpush.bf16.msra.mxu1 %v1491_v27 }
  0x8c   : > { %988 = vmatpush.bf16.msra.mxu0 %v1419_v31 }
  0x8d   : > { %1001 = vmatpush.bf16.msra.mxu1 %v1483_v33 }
  0x90   : > { %989 = vmatpush.bf16.msra.mxu0 %v1411_v38 }
  0x91   : > { %1002 = vmatpush.bf16.msra.mxu1 %v1475_v39 }
  0x94   : > { %990 = vmatpush.bf16.msra.mxu0 %v1403_v44 }
  0x95   : > { %1003 = vmatpush.bf16.msra.mxu1 %v1467_v45 }
  0x98   : > { %991 = vmatpush.bf16.msra.mxu0 %v1395_v51 }
  0x99   : > { %1004 = vmatpush.bf16.msra.mxu1 %v1459_v52 }
  0xd8   : > { %v540_v54 = vpop.f32.mrf.mxu0 }
  0xd9   : > { %v553_v55 = vpop.f32.mrf.mxu1  ;;  %v541_v56 = vadd.f32 %v540_v54, %v367_v53 }
  0xdb   : > { %v554_v59 = vadd.f32 %v553_v55, %v541_v56 }
  0xe0   : > { %v566_v58 = vpop.f32.mrf.mxu2  ;;  %v542_v62 = vpop.f32.mrf.mxu0 }
  0xe1   : > { %v567_v60 = vadd.f32 %v566_v58, %v368_v57  ;;  %v579_v61 = vpop.f32.mrf.mxu3  ;;  %v555_v63 = vpop.f32.mrf.mxu1 }
  0xe3   : > { %v580_v0 = vadd.f32 %v579_v61, %v567_v60 }
  0xe5   : > { %v583_v1 = vpack.c.bf16 %v580_v0, %v554_v59 }
  0xe7   : > { %v623_v2 = vunpack.c.l.b16 %v583_v1  ;;  %v624_v3 = vunpack.c.h.b16 %v583_v1 }
  0xe8   : > { %v568_v4 = vpop.f32.mrf.mxu2 }
  0xe9   : > { %v581_v5 = vpop.f32.mrf.mxu3  ;;  %v625_v6 = vpack.c.b16 %v623_v2, %v623_v2  ;;  %v626_v7 = vpack.c.b16 %v624_v3, %v624_v3 }
  0xeb   : > { %733 = vmatmul.bf16.vlgmr.msrb.gmra.mxu0 %v625_v6  ;;  %746 = vmatmul.bf16.vlgmr.msrb.gmra.mxu1 %v626_v7 }
  0xec   : > { %966 = vmatmul.bf16.vlgmr.msrb.gmra.mxu2 %v625_v6  ;;  %979 = vmatmul.bf16.vlgmr.msrb.gmra.mxu3 %v626_v7 }
  0xfb   : > { %992 = vmatmul.bf16.vlgmr.msra.gmra.mxu0 %v625_v6  ;;  %1005 = vmatmul.bf16.vlgmr.msra.gmra.mxu1 %v626_v7 }
 0x168   : > { %v734_v9 = vpop.f32.mrf.mxu0  ;;  %v747_v10 = vpop.f32.mrf.mxu1 }
 0x169   : > { %v735_v11 = vadd.f32 %v1691_v8, %v734_v9 }
 0x16b   : > { %v748_v13 = vadd.f32 %v747_v10, %v735_v11 }
 0x16d   : > { %751 = vst [vmem:[%s328_s16] sm:$0xff] %v748_v13 }
 0x16e   : > { %1839 = shalt.err (!%p1836_p9)
}
 0x16f   : > { %1620 = dma.vmem_to_hbm [thread:$0]  (%p2038_p13), %s1046_s14, 128, %s1048_s17, %s1018_s7   ;;  %v967_v15 = vpop.f32.mrf.mxu2  ;;  %v980_v16 = vpop.f32.mrf.mxu3  ;;  %v788_v21 = vperm.slane %v785_v12, 1 }
 0x170   : > { %v968_v17 = vadd.f32 %v967_v15, %v787_v14  ;;  %v736_v18 = vpop.f32.mrf.mxu0  ;;  %v749_v19 = vpop.f32.mrf.mxu1  ;;  %s1604_s16 = sshll.u32 %s1986_s28, 4  ;;  %s321_s18 = scalar_lea.vmem [#allocation11], %s1190_s20 }
 0x171   : > { %s1029_s29 = scalar_lea.hbm %s2153_s5, %s1604_s16  ;;  %s1031_s14 = sshll.u32 %s321_s18, 4  ;;  %s1032_s14 = int_to_ptr.vmem [resolvable:$true] %s1031_s14 }
 0x172   : > { %v981_v20 = vadd.f32 %v980_v16, %v968_v17  ;;  %s1033_s17 = sshll.u32 %s1029_s29, 4  ;;  %s1013_s28 = scalar_lea.sflag [#allocation5], %s2069_s12  ;;  %s1034_s17 = int_to_ptr.hbm [resolvable:$true] %s1033_s17 }
 0x173   : > { %s1854_s20 = sshra.s32 %s1034_s17, 4  ;;  %s1860_s26 = scalar_lea.hbm %s2153_s5, 32  ;;  %s1855_s20 = int_to_ptr.hbm [resolvable:$true] %s1854_s20 }
 0x174   : > { %1010 = vst [vmem:[%s321_s18] sm:$0xff] %v981_v20  ;;  %s1856_s7 = scalar_lea.hbm %s1855_s20, 16  ;;  %p1861_p2 = scmp.lt.s32.totalorder %s1855_s20, %s2153_s5 }
 0x175   : > { %p1857_p10 = scmp.ne.s32.totalorder %s1855_s20, %s1856_s7  ;;  %p1862_p6 = scmp.lt.s32.totalorder %s1860_s26, %s1856_s7 }
 0x177   : > { %v969_v22 = vpop.f32.mrf.mxu2  ;;  %v982_v23 = vpop.f32.mrf.mxu3  ;;  %p1858_p11 = pnand %p1857_p10, %p2038_p13  ;;  %p1863_p1 = por %p1862_p6, %p1861_p2 }
 0x178   : > { %v993_v24 = vpop.f32.mrf.mxu0  ;;  %v1006_v25 = vpop.f32.mrf.mxu1 }
 0x179   : > { %v994_v26 = vadd.f32 %v993_v24, %v788_v21  ;;  %p1859_p0 = pneg %p1858_p11 }
 0x17b   : > { %v1007_v27 = vadd.f32 %v1006_v25, %v994_v26  ;;  %p1864_p3 = pnand %p1863_p1, %p1859_p0 }
 0x17d   : > { %1011 = vst [vmem:[%s321_s18 + $0x8] sm:$0xff] %v1007_v27 }
 0x17e   : > { %1867 = shalt.err (!%p1864_p3)
}
 0x17f   : > { %1619 = dma.vmem_to_hbm [thread:$0]  (%p2038_p13), %s1032_s14, 256, %s1034_s17, %s1013_s28  }
 0x180   : > { %v995_v28 = vpop.f32.mrf.mxu0  ;;  %v1008_v29 = vpop.f32.mrf.mxu1 }
 0x181 PF: > { %s1059_s12 = sand.u32 1, %s1906_s21   ;;  %p2161_p5 = scmp.ge.s32.totalorder %s1918_s24, 2 }
 0x182   : > { %s1060_s16 = scalar_lea.sflag [#allocation5], %s1059_s12 }
 0x183   : > { %p1638_p12 = pnand %p2161_p5, %p2043_p4 }
 0x185   : > { %p1639_p8 = pneg %p1638_p12 }
 0x187   : > { %1897 = dma.done.wait (%p1639_p8), %s1060_s16, 256  }
 0x188   : > { %1899 = vsyncadd (%p1639_p8), %s1060_s16, 4294967040  ;;  %s1070_s18 = scalar_lea.sflag [#allocation13], %s1059_s12 }
 0x189   : > { %1901 = dma.done.wait (%p1639_p8), %s1070_s18, 128  }
 0x18a   : > { %1903 = vsyncadd (%p1639_p8), %s1070_s18, 4294967168  ;;  %p25_p13 = scmp.ge.s32.totalorder %s2018_s27, 4   ;;  %s2162_s21 = smov %s1910_s22 }
 0x18b   : > { %s2163_s22 = smov %s1914_s23  ;;  %s2164_s23 = smov %s2030_s9 }
 0x18c   : > { %s2165_s24 = smov %s2018_s27  ;;  %27 = sbr.rel (!%p25_p13) target bundleno = 9 (0x9), region = 114 }
 0x191   :  { %1076 = vsyncpa [#allocation4], 1 }
 0x192   :  { %1078 = vsyncpa [#allocation4 + $0x1], 1 }
 0x193   :  { %1079 = vsyncpa [#allocation7], 1 }
 0x194   :  { %1080 = vsyncpa [#allocation10], 1 }
 0x195   :  { %1081 = vsyncpa [#allocation5], 1 }
 0x196   :  { %1083 = vsyncpa [#allocation5 + $0x1], 1 }
 0x197   :  { %1084 = vsyncpa [#allocation13], 1 }
 0x198   :  { %1086 = vsyncpa [#allocation13 + $0x1], 1 }

// kernel: tpu_custom_call.1
= control target key start
LH: loop header
LB: loop body
LE: loop exit
PB: predicated region body
PF: predicated region fallthrough
CT: control target
= control target key end

     0   :  { %12 = vsyncpa [#allocation4], 0  ;;  %s2148_s0 = inlined_call_operand.hbm [shape: f32[16,256], index: 0, kind: input, shape index: {}]   ;;  %s2149_s1 = inlined_call_operand.hbm [shape: bf16[256,256], index: 1, kind: input, shape index: {}]   ;;  %s2150_s2 = inlined_call_operand.hbm [shape: f32[1,256], index: 2, kind: input, shape index: {}]   ;;  %s2151_s3 = inlined_call_operand.hbm [shape: bf16[256,384], index: 3, kind: input, shape index: {}]   ;;  %s2152_s4 = inlined_call_operand.vmem [shape: f32[1,384], index: 4, kind: input, shape index: {}]   ;;  %s2153_s5 = inlined_call_operand.hbm [shape: f32[16,256], index: 5, kind: output, shape index: {0}]   ;;  %s2154_s6 = inlined_call_operand.hbm [shape: f32[16,128], index: 6, kind: output, shape index: {1}]  }
   0x1   :  { %14 = vsyncpa [#allocation4 + $0x1], 0 }
   0x2   :  { %15 = vsyncpa [#allocation7], 0 }
   0x3   :  { %16 = vsyncpa [#allocation10], 0 }
   0x4   :  { %17 = vsyncpa [#allocation5], 0 }
   0x5   :  { %19 = vsyncpa [#allocation5 + $0x1], 0 }
   0x6   :  { %20 = vsyncpa [#allocation13], 0 }
   0x7   :  { %22 = vsyncpa [#allocation13 + $0x1], 0  ;;  %s1962_s21 = smov 0   ;;  %s1964_s22 = smov 0  }
   0x8   :  { %s1966_s23 = smov 0   ;;  %s1968_s24 = smov 0  }
   0x9 LB: > { %s206_s27 = sshll.u32 %s2149_s1, 4  ;;  %s1986_s28 = sadd.s32 4294967295, %s1918_s24   ;;  %s1918_s24 = sphi %s1968_s24, %s2165_s24   ;;  %s1914_s23 = sphi %s1966_s23, %s2164_s23   ;;  %s1910_s22 = sphi %s1964_s22, %s2163_s22   ;;  %s1906_s21 = sphi %s1962_s21, %s2162_s21   ;;  %s207_s27 = int_to_ptr.hbm [resolvable:$true] %s206_s27 }
   0xa   : > { %p1181_p0 = scmp.ge.s32.totalorder %s1918_s24, 1  ;;  %p49_p1 = scmp.eq.s32.totalorder %s1986_s28, 0 }
   0xb   : > { %p195_p2 = scmp.lt.s32.totalorder %s1918_s24, 3  ;;  %s1920_s30 = smov [#allocation6]  }
   0xc   : > { %s208_s7 = sshll.u32 %s1920_s30, 4  ;;  %s221_s10 = sshll.u32 %s2150_s2, 4  ;;  %s209_s7 = int_to_ptr.vmem [resolvable:$true] %s208_s7  ;;  %s222_s10 = int_to_ptr.hbm [resolvable:$true] %s221_s10 }
   0xd   : > { %p1991_p3 = pnand %p1181_p0, %p195_p2  ;;  %s232_s14 = sshll.u32 %s2151_s3, 4  ;;  %s233_s14 = int_to_ptr.hbm [resolvable:$true] %s232_s14 }
   0xe   : > { %s1921_s15 = smov [#allocation8]   ;;  %s1922_s17 = smov 128  }
   0xf   : > { %p1623_p4 = pneg %p1991_p3  ;;  %s223_s16 = sshll.u32 %s1921_s15, 4  ;;  %s224_s16 = int_to_ptr.vmem [resolvable:$true] %s223_s16 }
  0x10   : > { %s1923_s18 = smov 8   ;;  %s1924_s19 = smov [#allocation9]  }
  0x11   : > { %p2003_p6 = pnand %p1623_p4, %p49_p1  ;;  %s234_s20 = sshll.u32 %s1924_s19, 4  ;;  %s235_s20 = int_to_ptr.vmem [resolvable:$true] %s234_s20 }
  0x12   : > { %s1925_s25 = smov 192   ;;  %s1926_s26 = smov 12  }
  0x13   : > { %1626 = dma.hbm_to_vmem [thread:$0]  (!%p2003_p6), %s207_s27, 4096, %s209_s7, [#allocation7], %s1922_s17, %s1922_s17, %s1923_s18  }
  0x14   : > { %1629 = dma.hbm_to_vmem [thread:$0]  (!%p2003_p6), %s222_s10, 32, %s224_s16, [#allocation7]  }
  0x15   : > { %1632 = dma.hbm_to_vmem [thread:$0]  (!%p2003_p6), %s233_s14, 6144, %s235_s20, [#allocation10], %s1925_s25, %s1925_s25, %s1926_s26  }
  0x16   : > { %s1180_s30 = sadd.s32 4294967294, %s1918_s24   ;;  %s2018_s27 = sadd.s32 1, %s1918_s24  }
  0x17   : > { %s35_s7 = sadd.s32 1, %s1914_s23  ;;  %s32_s8 = ssub.s32 %s1918_s24, %s2018_s27 }
  0x18   : > { %p42_p7 = scmp.ne.s32.totalorder %s1914_s23, %s1910_s22  ;;  %p33_p8 = scmp.eq.s32.totalorder %s32_s8, 0 }
  0x19   : > { %p43_p9 = scmp.eq.s32.totalorder %s1918_s24, 0  ;;  %p48_p10 = scmp.ne.s32.totalorder %s1910_s22, %s1906_s21 }
  0x1a   : > { %p156_p11 = scmp.eq.s32.totalorder %s1986_s28, 1  ;;  %p162_p0 = scmp.eq.s32.totalorder %s1180_s30, 1 }
  0x1b   : > { %s2030_s9 = scalar_select %p33_p8, %s1914_s23, %s35_s7  }
  0x1c   : > { %p2034_p12 = por %p49_p1, %p48_p10  ;;  %p2038_p13 = por %p156_p11, %p42_p7 }
  0x1d   : > { %p44_p2 = por %p43_p9, %p42_p7  ;;  %s251_s12 = sand.u32 1, %s1914_s23  }
  0x1e   : > { %p2043_p4 = por %p162_p0, %p48_p10  ;;  %p1647_p6 = scmp.lt.s32.totalorder %s1918_s24, 2 }
  0x1f   : > { %s1186_s14 = sshll.u32 %s251_s12, 4  ;;  %s1523_s15 = sshll.u32 %s1918_s24, 4 }
  0x20   : > { %s260_s18 = scalar_lea.hbm %s2148_s0, %s1523_s15  ;;  %s255_s20 = scalar_lea.vmem [#allocation3], %s1186_s14 }
  0x21   : > { %s262_s19 = sshll.u32 %s260_s18, 4  ;;  %s264_s25 = sshll.u32 %s255_s20, 4  ;;  %s263_s19 = int_to_ptr.hbm [resolvable:$true] %s262_s19  ;;  %s265_s25 = int_to_ptr.vmem [resolvable:$true] %s264_s25 }
  0x22   : > { %p2052_p8 = pnand %p1647_p6, %p44_p2  ;;  %s252_s30 = scalar_lea.sflag [#allocation4], %s251_s12 }
  0x23   : > { %s1782_s7 = sshra.s32 %s263_s19, 4  ;;  %s1789_s14 = scalar_lea.hbm %s2148_s0, 32  ;;  %s1783_s7 = int_to_ptr.hbm [resolvable:$true] %s1782_s7 }
  0x24   : > { %s1784_s8 = scalar_lea.hbm %s1783_s7, 16  ;;  %p1786_p9 = pneg %p2052_p8 }
  0x25   : > { %p1785_p7 = scmp.ne.s32.totalorder %s1783_s7, %s1784_s8  ;;  %p1790_p0 = scmp.lt.s32.totalorder %s1783_s7, %s2148_s0 }
  0x26   : > { %p1791_p2 = scmp.lt.s32.totalorder %s1789_s14, %s1784_s8 }
  0x27   : > { %p1787_p10 = pnand %p1786_p9, %p1785_p7 }
  0x28   : > { %p1792_p6 = por %p1791_p2, %p1790_p0 }
  0x29   : > { %p1788_p11 = pneg %p1787_p10 }
  0x2b   : > { %p1793_p5 = pnand %p1792_p6, %p1788_p11 }
  0x2d   : > { %1796 = shalt.err (!%p1793_p5)
}
  0x2e   : > { %1636 = dma.hbm_to_vmem [thread:$0]  (!%p2052_p8), %s263_s19, 256, %s265_s25, %s252_s30  }
  0x2f   : > { %273 = sbr.rel (%p1991_p3) target bundleno = 385 (0x181), region = 40  ;;  %s2069_s12 = sand.u32 (!%p1991_p3), 1, %s1910_s22  }
  0x30   : > { %s1190_s20 = sshll.u32 (!%p1991_p3), %s2069_s12, 4  ;;  %s276_s15 = scalar_lea.sflag (!%p1991_p3), [#allocation4], %s2069_s12 }
  0x31   : > { %s2075_s7 = scalar_lea.vmem (!%p1991_p3), [#allocation3], %s1190_s20 }
  0x34   : > { %1885 = dma.done.wait (%p2034_p12), %s276_s15, 256  }
  0x35   : > { %1887 = vsyncadd (%p2034_p12), %s276_s15, 4294967040 }
  0x36   : > { %1889 = dma.done.wait (%p49_p1), [#allocation7], 4128  }
  0x37   : > { %1891 = vsyncadd (%p49_p1), [#allocation7], 4294963168 }
  0x38   : > { %1893 = dma.done.wait (%p49_p1), [#allocation10], 6144  }
  0x39   : > { %1895 = vsyncadd (%p49_p1), [#allocation10], 4294961152  ;;  %v1254_v0 = vld [vmem:[#allocation6 + $0x70] sm:$0xf]  ;;  %v1539_v1 = vld [vmem:[#allocation6 + $0x74] sm:$0xf0] }
  0x3a   : > { %v1318_v2 = vld [vmem:[#allocation6 + $0xf0] sm:$0xf]  ;;  %v1255_v3 = vor.u32 %v1539_v1, %v1254_v0  ;;  %v1555_v4 = vld [vmem:[#allocation6 + $0xf4] sm:$0xf0]  ;;  %v1538_v5 = vld [vmem:[#allocation6 + $0x74] sm:$0xf] }
  0x3b   : > { %v1256_v6 = vld [vmem:[#allocation6 + $0x78] sm:$0xf0]  ;;  %v1319_v7 = vor.u32 %v1555_v4, %v1318_v2  ;;  %v1554_v9 = vld [vmem:[#allocation6 + $0xf4] sm:$0xf]  ;;  %v1246_v11 = vld [vmem:[#allocation6 + $0x60] sm:$0xf] }
  0x3c   : > { %v1259_v8 = vor.u32 %v1538_v5, %v1256_v6  ;;  %v1320_v10 = vld [vmem:[#allocation6 + $0xf8] sm:$0xf0]  ;;  %531 = vmatpush.bf16.msra.mxu0 %v1255_v3  ;;  %v1537_v13 = vld [vmem:[#allocation6 + $0x64] sm:$0xf0]  ;;  %v1310_v14 = vld [vmem:[#allocation6 + $0xe0] sm:$0xf] }
  0x3d   : > { %v1323_v12 = vor.u32 %v1554_v9, %v1320_v10  ;;  %v1553_v15 = vld [vmem:[#allocation6 + $0xe4] sm:$0xf0]  ;;  %544 = vmatpush.bf16.msra.mxu1 %v1319_v7  ;;  %v1247_v16 = vor.u32 %v1537_v13, %v1246_v11  ;;  %v1536_v18 = vld [vmem:[#allocation6 + $0x64] sm:$0xf]  ;;  %v1248_v19 = vld [vmem:[#allocation6 + $0x68] sm:$0xf0] }
  0x3e   : > { %557 = vmatpush.bf16.msra.mxu2 %v1259_v8  ;;  %v1311_v17 = vor.u32 %v1553_v15, %v1310_v14  ;;  %v1552_v20 = vld [vmem:[#allocation6 + $0xe4] sm:$0xf]  ;;  %v1251_v21 = vor.u32 %v1536_v18, %v1248_v19  ;;  %v1312_v22 = vld [vmem:[#allocation6 + $0xe8] sm:$0xf0]  ;;  %v1238_v23 = vld [vmem:[#allocation6 + $0x50] sm:$0xf] }
  0x3f   : > { %570 = vmatpush.bf16.msra.mxu3 %v1323_v12  ;;  %v1535_v24 = vld [vmem:[#allocation6 + $0x54] sm:$0xf0]  ;;  %v1315_v25 = vor.u32 %v1552_v20, %v1312_v22  ;;  %v1302_v26 = vld [vmem:[#allocation6 + $0xd0] sm:$0xf]  ;;  %v1534_v28 = vld [vmem:[#allocation6 + $0x54] sm:$0xf] }
  0x40   : > { %v1551_v27 = vld [vmem:[#allocation6 + $0xd4] sm:$0xf0]  ;;  %532 = vmatpush.bf16.msra.mxu0 %v1247_v16  ;;  %v1239_v29 = vor.u32 %v1535_v24, %v1238_v23  ;;  %v1240_v30 = vld [vmem:[#allocation6 + $0x58] sm:$0xf0]  ;;  %v1550_v31 = vld [vmem:[#allocation6 + $0xd4] sm:$0xf] }
  0x41   : > { %v1304_v32 = vld [vmem:[#allocation6 + $0xd8] sm:$0xf0]  ;;  %545 = vmatpush.bf16.msra.mxu1 %v1311_v17  ;;  %v1303_v33 = vor.u32 %v1551_v27, %v1302_v26  ;;  %v1243_v34 = vor.u32 %v1534_v28, %v1240_v30  ;;  %v1230_v35 = vld [vmem:[#allocation6 + $0x40] sm:$0xf]  ;;  %v1533_v36 = vld [vmem:[#allocation6 + $0x44] sm:$0xf0] }
  0x42   : > { %558 = vmatpush.bf16.msra.mxu2 %v1251_v21  ;;  %v1294_v37 = vld [vmem:[#allocation6 + $0xc0] sm:$0xf]  ;;  %v1307_v38 = vor.u32 %v1550_v31, %v1304_v32  ;;  %v1549_v39 = vld [vmem:[#allocation6 + $0xc4] sm:$0xf0]  ;;  %v1532_v40 = vld [vmem:[#allocation6 + $0x44] sm:$0xf]  ;;  %v1231_v44 = vor.u32 %v1533_v36, %v1230_v35 }
  0x43   : > { %571 = vmatpush.bf16.msra.mxu3 %v1315_v25  ;;  %v1232_v41 = vld [vmem:[#allocation6 + $0x48] sm:$0xf0]  ;;  %v1548_v42 = vld [vmem:[#allocation6 + $0xc4] sm:$0xf]  ;;  %v1295_v45 = vor.u32 %v1549_v39, %v1294_v37  ;;  %v1222_v47 = vld [vmem:[#allocation6 + $0x30] sm:$0xf] }
  0x44   : > { %v1296_v43 = vld [vmem:[#allocation6 + $0xc8] sm:$0xf0]  ;;  %533 = vmatpush.bf16.msra.mxu0 %v1239_v29  ;;  %v1235_v46 = vor.u32 %v1532_v40, %v1232_v41  ;;  %v1531_v48 = vld [vmem:[#allocation6 + $0x34] sm:$0xf0]  ;;  %v1286_v49 = vld [vmem:[#allocation6 + $0xb0] sm:$0xf] }
  0x45   : > { %546 = vmatpush.bf16.msra.mxu1 %v1303_v33  ;;  %v1299_v50 = vor.u32 %v1548_v42, %v1296_v43  ;;  %v1547_v51 = vld [vmem:[#allocation6 + $0xb4] sm:$0xf0]  ;;  %v1530_v52 = vld [vmem:[#allocation6 + $0x34] sm:$0xf]  ;;  %v1224_v53 = vld [vmem:[#allocation6 + $0x38] sm:$0xf0]  ;;  %v1223_v56 = vor.u32 %v1531_v48, %v1222_v47 }
  0x46   : > { %559 = vmatpush.bf16.msra.mxu2 %v1243_v34  ;;  %v1546_v54 = vld [vmem:[#allocation6 + $0xb4] sm:$0xf]  ;;  %v1288_v55 = vld [vmem:[#allocation6 + $0xb8] sm:$0xf0]  ;;  %v1287_v57 = vor.u32 %v1547_v51, %v1286_v49  ;;  %v1227_v58 = vor.u32 %v1530_v52, %v1224_v53  ;;  %v1214_v59 = vld [vmem:[#allocation6 + $0x20] sm:$0xf] }
  0x47   : > { %572 = vmatpush.bf16.msra.mxu3 %v1307_v38  ;;  %v1529_v60 = vld [vmem:[#allocation6 + $0x24] sm:$0xf0]  ;;  %v1278_v61 = vld [vmem:[#allocation6 + $0xa0] sm:$0xf]  ;;  %v1291_v62 = vor.u32 %v1546_v54, %v1288_v55  ;;  %v1528_v0 = vld [vmem:[#allocation6 + $0x24] sm:$0xf] }
  0x48   : > { %534 = vmatpush.bf16.msra.mxu0 %v1231_v44  ;;  %v1545_v63 = vld [vmem:[#allocation6 + $0xa4] sm:$0xf0]  ;;  %v1216_v1 = vld [vmem:[#allocation6 + $0x28] sm:$0xf0]  ;;  %v1544_v2 = vld [vmem:[#allocation6 + $0xa4] sm:$0xf]  ;;  %v1215_v4 = vor.u32 %v1529_v60, %v1214_v59 }
  0x49   : > { %547 = vmatpush.bf16.msra.mxu1 %v1295_v45  ;;  %v1280_v3 = vld [vmem:[#allocation6 + $0xa8] sm:$0xf0]  ;;  %v1279_v5 = vor.u32 %v1545_v63, %v1278_v61  ;;  %v1219_v6 = vor.u32 %v1528_v0, %v1216_v1  ;;  %v1206_v7 = vld [vmem:[#allocation6 + $0x10] sm:$0xf]  ;;  %v1527_v8 = vld [vmem:[#allocation6 + $0x14] sm:$0xf0] }
  0x4a   : > { %560 = vmatpush.bf16.msra.mxu2 %v1235_v46  ;;  %v1270_v9 = vld [vmem:[#allocation6 + $0x90] sm:$0xf]  ;;  %v1283_v10 = vor.u32 %v1544_v2, %v1280_v3  ;;  %v1543_v11 = vld [vmem:[#allocation6 + $0x94] sm:$0xf0]  ;;  %v1526_v12 = vld [vmem:[#allocation6 + $0x14] sm:$0xf]  ;;  %v1207_v16 = vor.u32 %v1527_v8, %v1206_v7 }
  0x4b   : > { %573 = vmatpush.bf16.msra.mxu3 %v1299_v50  ;;  %v1208_v13 = vld [vmem:[#allocation6 + $0x18] sm:$0xf0]  ;;  %v1542_v14 = vld [vmem:[#allocation6 + $0x94] sm:$0xf]  ;;  %v1198_v17 = vld [vmem:[#allocation6] sm:$0xf]  ;;  %v1271_v18 = vor.u32 %v1543_v11, %v1270_v9 }
  0x4c   : > { %535 = vmatpush.bf16.msra.mxu0 %v1223_v56  ;;  %v1272_v15 = vld [vmem:[#allocation6 + $0x98] sm:$0xf0]  ;;  %v1211_v19 = vor.u32 %v1526_v12, %v1208_v13  ;;  %v1525_v20 = vld [vmem:[#allocation6 + $0x4] sm:$0xf0]  ;;  %v1262_v21 = vld [vmem:[#allocation6 + $0x80] sm:$0xf] }
  0x4d   : > { %548 = vmatpush.bf16.msra.mxu1 %v1287_v57  ;;  %v1541_v22 = vld [vmem:[#allocation6 + $0x84] sm:$0xf0]  ;;  %v1275_v23 = vor.u32 %v1542_v14, %v1272_v15  ;;  %v1524_v24 = vld [vmem:[#allocation6 + $0x4] sm:$0xf]  ;;  %v1200_v25 = vld [vmem:[#allocation6 + $0x8] sm:$0xf0]  ;;  %v1199_v30 = vor.u32 %v1525_v20, %v1198_v17 }
  0x4e   : > { %561 = vmatpush.bf16.msra.mxu2 %v1227_v58  ;;  %v1540_v26 = vld [vmem:[#allocation6 + $0x84] sm:$0xf]  ;;  %v1264_v27 = vld [vmem:[#allocation6 + $0x88] sm:$0xf0]  ;;  %v1563_v29 = vld [vmem:[#allocation9 + $0xb0] sm:$0xf0]  ;;  %v1263_v34 = vor.u32 %v1541_v22, %v1262_v21  ;;  %v1203_v35 = vor.u32 %v1524_v24, %v1200_v25 }
  0x4f   : > { %574 = vmatpush.bf16.msra.mxu3 %v1291_v62  ;;  %v1354_v28 = vld [vmem:[#allocation9 + $0xa8] sm:$0xf]  ;;  %v329_v31 = vld [vmem:[%s2075_s7] sm:$0xff]  ;;  %v1267_v37 = vor.u32 %v1540_v26, %v1264_v27  ;;  %v1587_v41 = vld [vmem:[#allocation9 + $0xb4] sm:$0xf0]  ;;  %s1520_s29 = sshll.u32 %s1986_s28, 3 }
  0x50   : > { %536 = vmatpush.bf16.msra.mxu0 %v1215_v4  ;;  %v1386_v32 = vld [vmem:[#allocation9 + $0x168] sm:$0xf]  ;;  %v1571_v33 = vld [vmem:[#allocation9 + $0x170] sm:$0xf0]  ;;  %v1355_v38 = vor.u32 %v1563_v29, %v1354_v28  ;;  %v1350_v39 = vld [vmem:[#allocation9 + $0x90] sm:$0xf]  ;;  %v331_v42 = vpack.c.bf16 %v329_v31, %v329_v31  ;;  %s1043_s8 = scalar_lea.hbm %s2154_s6, %s1520_s29 }
  0x51   : > { %549 = vmatpush.bf16.msra.mxu1 %v1279_v5  ;;  %v330_v36 = vld [vmem:[%s2075_s7 + $0x8] sm:$0xff]  ;;  %v1387_v43 = vor.u32 %v1571_v33, %v1386_v32  ;;  %v1382_v48 = vld [vmem:[#allocation9 + $0x150] sm:$0xf]  ;;  %v1585_v55 = vld [vmem:[#allocation9 + $0x9c] sm:$0xf0]  ;;  %s1195_s10 = sshll.u32 %s2069_s12, 3 }
  0x52   : > { %562 = vmatpush.bf16.msra.mxu2 %v1219_v6  ;;  %v1446_v40 = vld [vmem:[#allocation9 + $0xac] sm:$0xf]  ;;  %v1562_v44 = vld [vmem:[#allocation9 + $0x98] sm:$0xf0]  ;;  %v1603_v46 = vld [vmem:[#allocation9 + $0x174] sm:$0xf0]  ;;  %v332_v47 = vpack.c.bf16 %v330_v36, %v330_v36 }
  0x53   : > { %575 = vmatpush.bf16.msra.mxu3 %v1283_v10  ;;  %v1510_v45 = vld [vmem:[#allocation9 + $0x16c] sm:$0xf]  ;;  %v1570_v49 = vld [vmem:[#allocation9 + $0x158] sm:$0xf0]  ;;  %v1447_v50 = vor.u32 %v1587_v41, %v1446_v40  ;;  %v1351_v51 = vor.u32 %v1562_v44, %v1350_v39  ;;  %v1346_v52 = vld [vmem:[#allocation9 + $0x78] sm:$0xf] }
  0x54   : > { %537 = vmatpush.bf16.msra.mxu0 %v1207_v16  ;;  %v1511_v53 = vor.u32 %v1603_v46, %v1510_v45  ;;  %v1438_v54 = vld [vmem:[#allocation9 + $0x94] sm:$0xf]  ;;  %v1383_v56 = vor.u32 %v1570_v49, %v1382_v48  ;;  %v1561_v57 = vld [vmem:[#allocation9 + $0x80] sm:$0xf0]  ;;  %v1601_v59 = vld [vmem:[#allocation9 + $0x15c] sm:$0xf0] }
  0x55   : > { %550 = vmatpush.bf16.msra.mxu1 %v1271_v18  ;;  %v1502_v58 = vld [vmem:[#allocation9 + $0x154] sm:$0xf]  ;;  %v1378_v60 = vld [vmem:[#allocation9 + $0x138] sm:$0xf]  ;;  %v1569_v61 = vld [vmem:[#allocation9 + $0x140] sm:$0xf0]  ;;  %v1439_v63 = vor.u32 %v1585_v55, %v1438_v54  ;;  %v1347_v0 = vor.u32 %v1561_v57, %v1346_v52 }
  0x56   : > { %563 = vmatpush.bf16.msra.mxu2 %v1211_v19  ;;  %v1342_v62 = vld [vmem:[#allocation9 + $0x60] sm:$0xf]  ;;  %v1503_v1 = vor.u32 %v1601_v59, %v1502_v58  ;;  %v1430_v2 = vld [vmem:[#allocation9 + $0x7c] sm:$0xf]  ;;  %v1583_v3 = vld [vmem:[#allocation9 + $0x84] sm:$0xf0]  ;;  %v1379_v4 = vor.u32 %v1569_v61, %v1378_v60 }
  0x57   : > { %576 = vmatpush.bf16.msra.mxu3 %v1275_v23  ;;  %v1560_v5 = vld [vmem:[#allocation9 + $0x68] sm:$0xf0]  ;;  %v1494_v6 = vld [vmem:[#allocation9 + $0x13c] sm:$0xf]  ;;  %v1599_v7 = vld [vmem:[#allocation9 + $0x144] sm:$0xf0]  ;;  %v1431_v10 = vor.u32 %v1583_v3, %v1430_v2 }
  0x58   : > { %538 = vmatpush.bf16.msra.mxu0 %v1199_v30  ;;  %v1374_v8 = vld [vmem:[#allocation9 + $0x120] sm:$0xf]  ;;  %v1568_v9 = vld [vmem:[#allocation9 + $0x128] sm:$0xf0]  ;;  %v1343_v11 = vor.u32 %v1560_v5, %v1342_v62  ;;  %v1338_v12 = vld [vmem:[#allocation9 + $0x48] sm:$0xf]  ;;  %v1495_v13 = vor.u32 %v1599_v7, %v1494_v6 }
  0x59   : > { %551 = vmatpush.bf16.msra.mxu1 %v1263_v34  ;;  %v1422_v14 = vld [vmem:[#allocation9 + $0x64] sm:$0xf]  ;;  %v1581_v15 = vld [vmem:[#allocation9 + $0x6c] sm:$0xf0]  ;;  %v1375_v16 = vor.u32 %v1568_v9, %v1374_v8  ;;  %v1559_v17 = vld [vmem:[#allocation9 + $0x50] sm:$0xf0] }
  0x5a   : > { %564 = vmatpush.bf16.msra.mxu2 %v1203_v35  ;;  %v1486_v18 = vld [vmem:[#allocation9 + $0x124] sm:$0xf]  ;;  %v1597_v19 = vld [vmem:[#allocation9 + $0x12c] sm:$0xf0]  ;;  %v1370_v20 = vld [vmem:[#allocation9 + $0x108] sm:$0xf]  ;;  %v1423_v22 = vor.u32 %v1581_v15, %v1422_v14  ;;  %v1339_v23 = vor.u32 %v1559_v17, %v1338_v12 }
  0x5b   : > { %577 = vmatpush.bf16.msra.mxu3 %v1267_v37  ;;  %539 = vmatmul.bf16.vlgmr.msra.gmra.mxu0 %v331_v42  ;;  %v1567_v21 = vld [vmem:[#allocation9 + $0x110] sm:$0xf0]  ;;  %v1487_v24 = vor.u32 %v1597_v19, %v1486_v18  ;;  %v1334_v26 = vld [vmem:[#allocation9 + $0x30] sm:$0xf]  ;;  %v1558_v27 = vld [vmem:[#allocation9 + $0x38] sm:$0xf0] }
  0x5c   : > { %725 = vmatpush.bf16.msrb.mxu0 %v1355_v38  ;;  %552 = vmatmul.bf16.vlgmr.msra.gmra.mxu1 %v332_v47  ;;  %v1371_v25 = vor.u32 %v1567_v21, %v1370_v20  ;;  %v1366_v28 = vld [vmem:[#allocation9 + $0xf0] sm:$0xf]  ;;  %v1566_v29 = vld [vmem:[#allocation9 + $0xf8] sm:$0xf0]  ;;  %v1335_v30 = vor.u32 %v1558_v27, %v1334_v26  ;;  %v1330_v32 = vld [vmem:[#allocation9 + $0x18] sm:$0xf] }
  0x5d   : > { %738 = vmatpush.bf16.msrb.mxu1 %v1387_v43  ;;  %565 = vmatmul.bf16.vlgmr.msra.gmra.mxu2 %v331_v42  ;;  %v1367_v31 = vor.u32 %v1566_v29, %v1366_v28  ;;  %v1557_v33 = vld [vmem:[#allocation9 + $0x20] sm:$0xf0]  ;;  %v1362_v34 = vld [vmem:[#allocation9 + $0xd8] sm:$0xf]  ;;  %v1326_v38 = vld [vmem:[#allocation9] sm:$0xf] }
  0x5e   : > { %578 = vmatmul.bf16.vlgmr.msra.gmra.mxu3 %v332_v47  ;;  %958 = vmatpush.bf16.msrb.mxu2 %v1447_v50  ;;  %v1565_v35 = vld [vmem:[#allocation9 + $0xe0] sm:$0xf0]  ;;  %v1331_v36 = vor.u32 %v1557_v33, %v1330_v32  ;;  %v1556_v39 = vld [vmem:[#allocation9 + $0x8] sm:$0xf0]  ;;  %v1358_v40 = vld [vmem:[#allocation9 + $0xc0] sm:$0xf] }
  0x5f   : > { %971 = vmatpush.bf16.msrb.mxu3 %v1511_v53  ;;  %v1363_v37 = vor.u32 %v1565_v35, %v1362_v34  ;;  %v1327_v41 = vor.u32 %v1556_v39, %v1326_v38  ;;  %v1564_v42 = vld [vmem:[#allocation9 + $0xc8] sm:$0xf0]  ;;  %v1579_v44 = vld [vmem:[#allocation9 + $0x54] sm:$0xf0]  ;;  %v1586_v49 = vld [vmem:[#allocation9 + $0xb0] sm:$0xf] }
  0x60   : > { %726 = vmatpush.bf16.msrb.mxu0 %v1351_v51  ;;  %v1414_v43 = vld [vmem:[#allocation9 + $0x4c] sm:$0xf]  ;;  %v1359_v45 = vor.u32 %v1564_v42, %v1358_v40  ;;  %v1595_v48 = vld [vmem:[#allocation9 + $0x114] sm:$0xf0]  ;;  %v1448_v51 = vld [vmem:[#allocation9 + $0xb8] sm:$0xf0] }
  0x61   : > { %739 = vmatpush.bf16.msrb.mxu1 %v1383_v56  ;;  %v1415_v46 = vor.u32 %v1579_v44, %v1414_v43  ;;  %v1478_v47 = vld [vmem:[#allocation9 + $0x10c] sm:$0xf]  ;;  %v1602_v52 = vld [vmem:[#allocation9 + $0x170] sm:$0xf]  ;;  %v1512_v53 = vld [vmem:[#allocation9 + $0x178] sm:$0xf0]  ;;  %v1451_v54 = vor.u32 %v1586_v49, %v1448_v51 }
  0x62   : > { %959 = vmatpush.bf16.msrb.mxu2 %v1439_v63  ;;  %v1479_v50 = vor.u32 %v1595_v48, %v1478_v47  ;;  %v1515_v55 = vor.u32 %v1602_v52, %v1512_v53  ;;  %v1406_v56 = vld [vmem:[#allocation9 + $0x34] sm:$0xf]  ;;  %v1577_v57 = vld [vmem:[#allocation9 + $0x3c] sm:$0xf0]  ;;  %v1584_v61 = vld [vmem:[#allocation9 + $0x98] sm:$0xf] }
  0x63   : > { %972 = vmatpush.bf16.msrb.mxu3 %v1503_v1  ;;  %v1470_v58 = vld [vmem:[#allocation9 + $0xf4] sm:$0xf]  ;;  %v1407_v59 = vor.u32 %v1577_v57, %v1406_v56  ;;  %v1593_v60 = vld [vmem:[#allocation9 + $0xfc] sm:$0xf0]  ;;  %v1440_v62 = vld [vmem:[#allocation9 + $0xa0] sm:$0xf0] }
  0x64   : > { %727 = vmatpush.bf16.msrb.mxu0 %v1347_v0  ;;  %v1471_v63 = vor.u32 %v1593_v60, %v1470_v58  ;;  %v1443_v0 = vor.u32 %v1584_v61, %v1440_v62  ;;  %v1600_v1 = vld [vmem:[#allocation9 + $0x158] sm:$0xf]  ;;  %v1504_v2 = vld [vmem:[#allocation9 + $0x160] sm:$0xf0]  ;;  %v1575_v5 = vld [vmem:[#allocation9 + $0x24] sm:$0xf0] }
  0x65   : > { %740 = vmatpush.bf16.msrb.mxu1 %v1379_v4  ;;  %v1507_v3 = vor.u32 %v1600_v1, %v1504_v2  ;;  %v1398_v4 = vld [vmem:[#allocation9 + $0x1c] sm:$0xf]  ;;  %v1591_v8 = vld [vmem:[#allocation9 + $0xe4] sm:$0xf0]  ;;  %v1582_v9 = vld [vmem:[#allocation9 + $0x80] sm:$0xf] }
  0x66   : > { %960 = vmatpush.bf16.msrb.mxu2 %v1431_v10  ;;  %v1462_v6 = vld [vmem:[#allocation9 + $0xdc] sm:$0xf]  ;;  %v1399_v7 = vor.u32 %v1575_v5, %v1398_v4  ;;  %v1432_v10 = vld [vmem:[#allocation9 + $0x88] sm:$0xf0]  ;;  %v1573_v17 = vld [vmem:[#allocation9 + $0xc] sm:$0xf0] }
  0x67   : > { %973 = vmatpush.bf16.msrb.mxu3 %v1495_v13  ;;  %v1435_v12 = vor.u32 %v1582_v9, %v1432_v10  ;;  %v1598_v13 = vld [vmem:[#allocation9 + $0x140] sm:$0xf]  ;;  %v1496_v14 = vld [vmem:[#allocation9 + $0x148] sm:$0xf0]  ;;  %v1454_v18 = vld [vmem:[#allocation9 + $0xc4] sm:$0xf] }
  0x68   : > { %728 = vmatpush.bf16.msrb.mxu0 %v1343_v11  ;;  %v1463_v11 = vor.u32 %v1591_v8, %v1462_v6  ;;  %v1499_v15 = vor.u32 %v1598_v13, %v1496_v14  ;;  %v1589_v20 = vld [vmem:[#allocation9 + $0xcc] sm:$0xf0]  ;;  %v1580_v21 = vld [vmem:[#allocation9 + $0x68] sm:$0xf]  ;;  %v1488_v26 = vld [vmem:[#allocation9 + $0x130] sm:$0xf0] }
  0x69   : > { %741 = vmatpush.bf16.msrb.mxu1 %v1375_v16  ;;  %v1390_v16 = vld [vmem:[#allocation9 + $0x4] sm:$0xf]  ;;  %v1578_v28 = vld [vmem:[#allocation9 + $0x50] sm:$0xf]  ;;  %v1416_v29 = vld [vmem:[#allocation9 + $0x58] sm:$0xf0] }
  0x6a   : > { %961 = vmatpush.bf16.msrb.mxu2 %v1423_v22  ;;  %v1391_v19 = vor.u32 %v1573_v17, %v1390_v16  ;;  %v1424_v22 = vld [vmem:[#allocation9 + $0x70] sm:$0xf0]  ;;  %v1480_v32 = vld [vmem:[#allocation9 + $0x118] sm:$0xf0]  ;;  %v1576_v34 = vld [vmem:[#allocation9 + $0x38] sm:$0xf] }
  0x6b   : > { %974 = vmatpush.bf16.msrb.mxu3 %v1487_v24  ;;  %v1427_v24 = vor.u32 %v1580_v21, %v1424_v22  ;;  %v1408_v35 = vld [vmem:[#allocation9 + $0x40] sm:$0xf0]  ;;  %v1574_v40 = vld [vmem:[#allocation9 + $0x20] sm:$0xf]  ;;  %v1464_v43 = vld [vmem:[#allocation9 + $0xe8] sm:$0xf0] }
  0x6c   : > { %729 = vmatpush.bf16.msrb.mxu0 %v1339_v23  ;;  %v1455_v23 = vor.u32 %v1589_v20, %v1454_v18  ;;  %v1411_v38 = vor.u32 %v1576_v34, %v1408_v35  ;;  %v1590_v42 = vld [vmem:[#allocation9 + $0xe0] sm:$0xf]  ;;  %v1392_v47 = vld [vmem:[#allocation9 + $0x10] sm:$0xf0]  ;;  %v1588_v48 = vld [vmem:[#allocation9 + $0xc8] sm:$0xf] }
  0x6d   : > { %742 = vmatpush.bf16.msrb.mxu1 %v1371_v25  ;;  %v1596_v25 = vld [vmem:[#allocation9 + $0x128] sm:$0xf]  ;;  %v1456_v49 = vld [vmem:[#allocation9 + $0xd0] sm:$0xf0]  ;;  %v1691_v8 = vld [vmem:[%s2152_s4] ss:$0 sm:$0xff] }
  0x6e   : > { %962 = vmatpush.bf16.msrb.mxu2 %v1415_v46  ;;  %v1491_v27 = vor.u32 %v1596_v25, %v1488_v26  ;;  %v1572_v46 = vld [vmem:[#allocation9 + $0x8] sm:$0xf]  ;;  %v1459_v52 = vor.u32 %v1588_v48, %v1456_v49  ;;  %s328_s16 = scalar_lea.vmem [#allocation12], %s1195_s10  ;;  %s1047_s17 = sshll.u32 %s1043_s8, 4  ;;  %s1048_s17 = int_to_ptr.hbm [resolvable:$true] %s1047_s17 }
  0x6f   : > { %975 = vmatpush.bf16.msrb.mxu3 %v1479_v50  ;;  %v365_v50 = vld [vmem:[#allocation8] sm:$0x3]  ;;  %v1395_v51 = vor.u32 %v1572_v46, %v1392_v47  ;;  %s1045_s14 = sshll.u32 %s328_s16, 4  ;;  %s1018_s7 = scalar_lea.sflag [#allocation13], %s2069_s12  ;;  %s1046_s14 = int_to_ptr.vmem [resolvable:$true] %s1045_s14 }
  0x70   : > { %730 = vmatpush.bf16.msrb.mxu0 %v1335_v30  ;;  %v1594_v30 = vld [vmem:[#allocation9 + $0x110] sm:$0xf]  ;;  %v367_v53 = vperm.slane %v365_v50, 0  ;;  %v368_v57 = vperm.slane %v365_v50, 1  ;;  %s1826_s19 = sshra.s32 %s1048_s17, 4  ;;  %s1832_s26 = scalar_lea.hbm %s2154_s6, 16  ;;  %s1827_s19 = int_to_ptr.hbm [resolvable:$true] %s1826_s19 }
  0x71   : > { %743 = vmatpush.bf16.msrb.mxu1 %v1367_v31  ;;  %v1419_v31 = vor.u32 %v1578_v28, %v1416_v29  ;;  %v1483_v33 = vor.u32 %v1594_v30, %v1480_v32  ;;  %s1828_s29 = scalar_lea.hbm %s1827_s19, 8  ;;  %p1833_p12 = scmp.lt.s32.totalorder %s1827_s19, %s2154_s6 }
  0x72   : > { %963 = vmatpush.bf16.msrb.mxu2 %v1407_v59  ;;  %p1829_p1 = scmp.ne.s32.totalorder %s1827_s19, %s1828_s29  ;;  %p1834_p8 = scmp.lt.s32.totalorder %s1832_s26, %s1828_s29 }
  0x73   : > { %976 = vmatpush.bf16.msrb.mxu3 %v1471_v63 }
  0x74   : > { %731 = vmatpush.bf16.msrb.mxu0 %v1331_v36  ;;  %v1592_v36 = vld [vmem:[#allocation9 + $0xf8] sm:$0xf]  ;;  %p1830_p3 = pnand %p1829_p1, %p2038_p13  ;;  %p1835_p7 = por %p1834_p8, %p1833_p12 }
  0x75   : > { %744 = vmatpush.bf16.msrb.mxu1 %v1363_v37  ;;  %v1472_v37 = vld [vmem:[#allocation9 + $0x100] sm:$0xf0] }
  0x76   : > { %964 = vmatpush.bf16.msrb.mxu2 %v1399_v7  ;;  %v1475_v39 = vor.u32 %v1592_v36, %v1472_v37  ;;  %p1831_p5 = pneg %p1830_p3 }
  0x77   : > { %977 = vmatpush.bf16.msrb.mxu3 %v1463_v11 }
  0x78   : > { %732 = vmatpush.bf16.msrb.mxu0 %v1327_v41  ;;  %v1400_v41 = vld [vmem:[#allocation9 + $0x28] sm:$0xf0]  ;;  %p1836_p9 = pnand %p1835_p7, %p1831_p5 }
  0x79   : > { %745 = vmatpush.bf16.msrb.mxu1 %v1359_v45  ;;  %v1403_v44 = vor.u32 %v1574_v40, %v1400_v41  ;;  %v1467_v45 = vor.u32 %v1590_v42, %v1464_v43 }
  0x7a   : > { %965 = vmatpush.bf16.msrb.mxu2 %v1391_v19 }
  0x7b   : > { %978 = vmatpush.bf16.msrb.mxu3 %v1455_v23 }
  0x7c   : > { %984 = vmatpush.bf16.msra.mxu0 %v1451_v54 }
  0x7d   : > { %997 = vmatpush.bf16.msra.mxu1 %v1515_v55 }
  0x80   : > { %985 = vmatpush.bf16.msra.mxu0 %v1443_v0 }
  0x81   : > { %998 = vmatpush.bf16.msra.mxu1 %v1507_v3 }
  0x84   : > { %986 = vmatpush.bf16.msra.mxu0 %v1435_v12  ;;  %v785_v12 = vld [vmem:[%s2152_s4 + $0x1] sm:$0x3] }
  0x85   : > { %999 = vmatpush.bf16.msra.mxu1 %v1499_v15  ;;  %v787_v14 = vperm.slane %v785_v12, 0 }
  0x88   : > { %987 = vmatpush.bf16.msra.mxu0 %v1427_v24 }
  0x89   : > { %1000 = vmatpush.bf16.msra.mxu1 %v1491_v27 }
  0x8c   : > { %988 = vmatpush.bf16.msra.mxu0 %v1419_v31 }
  0x8d   : > { %1001 = vmatpush.bf16.msra.mxu1 %v1483_v33 }
  0x90   : > { %989 = vmatpush.bf16.msra.mxu0 %v1411_v38 }
  0x91   : > { %1002 = vmatpush.bf16.msra.mxu1 %v1475_v39 }
  0x94   : > { %990 = vmatpush.bf16.msra.mxu0 %v1403_v44 }
  0x95   : > { %1003 = vmatpush.bf16.msra.mxu1 %v1467_v45 }
  0x98   : > { %991 = vmatpush.bf16.msra.mxu0 %v1395_v51 }
  0x99   : > { %1004 = vmatpush.bf16.msra.mxu1 %v1459_v52 }
  0xd8   : > { %v540_v54 = vpop.f32.mrf.mxu0 }
  0xd9   : > { %v553_v55 = vpop.f32.mrf.mxu1  ;;  %v541_v56 = vadd.f32 %v540_v54, %v367_v53 }
  0xdb   : > { %v554_v59 = vadd.f32 %v553_v55, %v541_v56 }
  0xe0   : > { %v566_v58 = vpop.f32.mrf.mxu2  ;;  %v542_v62 = vpop.f32.mrf.mxu0 }
  0xe1   : > { %v567_v60 = vadd.f32 %v566_v58, %v368_v57  ;;  %v579_v61 = vpop.f32.mrf.mxu3  ;;  %v555_v63 = vpop.f32.mrf.mxu1 }
  0xe3   : > { %v580_v0 = vadd.f32 %v579_v61, %v567_v60 }
  0xe5   : > { %v583_v1 = vpack.c.bf16 %v580_v0, %v554_v59 }
  0xe7   : > { %v623_v2 = vunpack.c.l.b16 %v583_v1  ;;  %v624_v3 = vunpack.c.h.b16 %v583_v1 }
  0xe8   : > { %v568_v4 = vpop.f32.mrf.mxu2 }
  0xe9   : > { %v581_v5 = vpop.f32.mrf.mxu3  ;;  %v625_v6 = vpack.c.b16 %v623_v2, %v623_v2  ;;  %v626_v7 = vpack.c.b16 %v624_v3, %v624_v3 }
  0xeb   : > { %733 = vmatmul.bf16.vlgmr.msrb.gmra.mxu0 %v625_v6  ;;  %746 = vmatmul.bf16.vlgmr.msrb.gmra.mxu1 %v626_v7 }
  0xec   : > { %966 = vmatmul.bf16.vlgmr.msrb.gmra.mxu2 %v625_v6  ;;  %979 = vmatmul.bf16.vlgmr.msrb.gmra.mxu3 %v626_v7 }
  0xfb   : > { %992 = vmatmul.bf16.vlgmr.msra.gmra.mxu0 %v625_v6  ;;  %1005 = vmatmul.bf16.vlgmr.msra.gmra.mxu1 %v626_v7 }
 0x168   : > { %v734_v9 = vpop.f32.mrf.mxu0  ;;  %v747_v10 = vpop.f32.mrf.mxu1 }
 0x169   : > { %v735_v11 = vadd.f32 %v1691_v8, %v734_v9 }
 0x16b   : > { %v748_v13 = vadd.f32 %v747_v10, %v735_v11 }
 0x16d   : > { %751 = vst [vmem:[%s328_s16] sm:$0xff] %v748_v13 }
 0x16e   : > { %1839 = shalt.err (!%p1836_p9)
}
 0x16f   : > { %1620 = dma.vmem_to_hbm [thread:$0]  (%p2038_p13), %s1046_s14, 128, %s1048_s17, %s1018_s7   ;;  %v967_v15 = vpop.f32.mrf.mxu2  ;;  %v980_v16 = vpop.f32.mrf.mxu3  ;;  %v788_v21 = vperm.slane %v785_v12, 1 }
 0x170   : > { %v968_v17 = vadd.f32 %v967_v15, %v787_v14  ;;  %v736_v18 = vpop.f32.mrf.mxu0  ;;  %v749_v19 = vpop.f32.mrf.mxu1  ;;  %s1604_s16 = sshll.u32 %s1986_s28, 4  ;;  %s321_s18 = scalar_lea.vmem [#allocation11], %s1190_s20 }
 0x171   : > { %s1029_s29 = scalar_lea.hbm %s2153_s5, %s1604_s16  ;;  %s1031_s14 = sshll.u32 %s321_s18, 4  ;;  %s1032_s14 = int_to_ptr.vmem [resolvable:$true] %s1031_s14 }
 0x172   : > { %v981_v20 = vadd.f32 %v980_v16, %v968_v17  ;;  %s1033_s17 = sshll.u32 %s1029_s29, 4  ;;  %s1013_s28 = scalar_lea.sflag [#allocation5], %s2069_s12  ;;  %s1034_s17 = int_to_ptr.hbm [resolvable:$true] %s1033_s17 }
 0x173   : > { %s1854_s20 = sshra.s32 %s1034_s17, 4  ;;  %s1860_s26 = scalar_lea.hbm %s2153_s5, 32  ;;  %s1855_s20 = int_to_ptr.hbm [resolvable:$true] %s1854_s20 }
 0x174   : > { %1010 = vst [vmem:[%s321_s18] sm:$0xff] %v981_v20  ;;  %s1856_s7 = scalar_lea.hbm %s1855_s20, 16  ;;  %p1861_p2 = scmp.lt.s32.totalorder %s1855_s20, %s2153_s5 }
 0x175   : > { %p1857_p10 = scmp.ne.s32.totalorder %s1855_s20, %s1856_s7  ;;  %p1862_p6 = scmp.lt.s32.totalorder %s1860_s26, %s1856_s7 }
 0x177   : > { %v969_v22 = vpop.f32.mrf.mxu2  ;;  %v982_v23 = vpop.f32.mrf.mxu3  ;;  %p1858_p11 = pnand %p1857_p10, %p2038_p13  ;;  %p1863_p1 = por %p1862_p6, %p1861_p2 }
 0x178   : > { %v993_v24 = vpop.f32.mrf.mxu0  ;;  %v1006_v25 = vpop.f32.mrf.mxu1 }
 0x179   : > { %v994_v26 = vadd.f32 %v993_v24, %v788_v21  ;;  %p1859_p0 = pneg %p1858_p11 }
 0x17b   : > { %v1007_v27 = vadd.f32 %v1006_v25, %v994_v26  ;;  %p1864_p3 = pnand %p1863_p1, %p1859_p0 }
 0x17d   : > { %1011 = vst [vmem:[%s321_s18 + $0x8] sm:$0xff] %v1007_v27 }
 0x17e   : > { %1867 = shalt.err (!%p1864_p3)
}
 0x17f   : > { %1619 = dma.vmem_to_hbm [thread:$0]  (%p2038_p13), %s1032_s14, 256, %s1034_s17, %s1013_s28  }
 0x180   : > { %v995_v28 = vpop.f32.mrf.mxu0  ;;  %v1008_v29 = vpop.f32.mrf.mxu1 }
 0x181 PF: > { %s1059_s12 = sand.u32 1, %s1906_s21   ;;  %p2161_p5 = scmp.ge.s32.totalorder %s1918_s24, 2 }
 0x182   : > { %s1060_s16 = scalar_lea.sflag [#allocation5], %s1059_s12 }
 0x183   : > { %p1638_p12 = pnand %p2161_p5, %p2043_p4 }
 0x185   : > { %p1639_p8 = pneg %p1638_p12 }
 0x187   : > { %1897 = dma.done.wait (%p1639_p8), %s1060_s16, 256  }
 0x188   : > { %1899 = vsyncadd (%p1639_p8), %s1060_s16, 4294967040  ;;  %s1070_s18 = scalar_lea.sflag [#allocation13], %s1059_s12 }
 0x189   : > { %1901 = dma.done.wait (%p1639_p8), %s1070_s18, 128  }
 0x18a   : > { %1903 = vsyncadd (%p1639_p8), %s1070_s18, 4294967168  ;;  %p25_p13 = scmp.ge.s32.totalorder %s2018_s27, 4   ;;  %s2162_s21 = smov %s1910_s22 }
 0x18b   : > { %s2163_s22 = smov %s1914_s23  ;;  %s2164_s23 = smov %s2030_s9 }
 0x18c   : > { %s2165_s24 = smov %s2018_s27  ;;  %27 = sbr.rel (!%p25_p13) target bundleno = 9 (0x9), region = 114 }
 0x191   :  { %1076 = vsyncpa [#allocation4], 1 }
 0x192   :  { %1078 = vsyncpa [#allocation4 + $0x1], 1 }
 0x193   :  { %1079 = vsyncpa [#allocation7], 1 }
 0x194   :  { %1080 = vsyncpa [#allocation10], 1 }
 0x195   :  { %1081 = vsyncpa [#allocation5], 1 }
 0x196   :  { %1083 = vsyncpa [#allocation5 + $0x1], 1 }
 0x197   :  { %1084 = vsyncpa [#allocation13], 1 }
 0x198   :  { %1086 = vsyncpa [#allocation13 + $0x1], 1 }

</bundles_post_ra>
